<compile_context>
chip_gen: v5e
topology: v5e:2x2
jax: 0.10.0
libtpu: 0.0.40
codegen_flags: <defaults>
</compile_context>

<pallas_src>
import functools
import math

import jax
import jax.numpy as jnp
from jax import lax
from jax.experimental import pallas as pl
from jax.experimental.pallas import tpu as pltpu


def _conv3d_cd_kernel(x_ref, wb_ref, out_ref, *, TD, H, Wci, Wco):
    """One (sample, depth-tile) per grid step.

    x_ref:   (TD+2, H+2, Wci)  bf16, D/H zero-padded window; lane dim = (w, ci).
    wb_ref:  (9, Wci, Wco)     bf16, banded weights per (kd, kh) tap; the kw/ci
                               reduction, W zero-padding and the central-
                               difference term are all folded in.
    out_ref: (TD, H, Wco)      f32, lane dim = (w, co).
    """
    # Two independent accumulator chains (summed once at the end) so the VPU
    # adds that drain the MXU result FIFO do not form one serial chain.
    accs = [jnp.zeros((TD * H, Wco), jnp.float32) for _ in range(2)]
    tap = 0
    # kh OUTER / kd INNER: the H slice at offset 1/2 is a sublane-shift
    # relayout (XLU work sharing the vector-extended slot with MXU pushes),
    # so take it once per kh and reuse it for all three kd taps.  The kd
    # slices below run along the major (depth) axis and are free relabels
    # because H % 8 == 0.
    for kh in range(3):
        slab = x_ref[:, pl.ds(kh, H), :]                    # (TD+2, H, Wci)
        for kd in range(3):
            lhs = slab[kd:kd + TD].reshape(TD * H, Wci)     # free tile relabel
            accs[tap % 2] = accs[tap % 2] + jnp.dot(
                lhs, wb_ref[kd * 3 + kh],
                preferred_element_type=jnp.float32)
            tap += 1
    out_ref[...] = (accs[0] + accs[1]).reshape(TD, H, Wco).astype(out_ref.dtype)


def _prep_banded_weights(weight, theta, W):
    """Fold the CD term into the center tap and build the 9 banded matrices."""
    C_out, C_in = weight.shape[0], weight.shape[1]
    w_eff = weight
    if math.fabs(theta) >= 1e-8:
        kdiff = (weight[:, :, 0].sum(axis=(2, 3)) +
                 weight[:, :, 2].sum(axis=(2, 3)))              # (C_out, C_in)
        delta = jnp.zeros_like(weight).at[:, :, 1, 1, 1].set(
            jnp.asarray(theta, weight.dtype) * kdiff)
        w_eff = weight - delta                                   # lossless fold

    w_t = jnp.transpose(w_eff, (2, 3, 4, 1, 0))  # (kd, kh, kw, ci, co)

    # shift[kw, w_in, w_out] = 1 iff w_in == w_out + kw - 1 (valid range);
    # out-of-range taps are simply absent => implicit zero-padding along W.
    kw_idx = jnp.arange(3)[:, None, None]
    w_in = jnp.arange(W)[None, :, None]
    w_out = jnp.arange(W)[None, None, :]
    shift = (w_in == (w_out + kw_idx - 1)).astype(w_eff.dtype)   # (3, W, W)

    # wb[kd, kh, w_in, ci, w_out, co] = sum_kw shift[kw, w_in, w_out]
    #                                   * w_eff[co, ci, kd, kh, kw]
    wb = jnp.einsum('kuv,dhkio->dhuivo', shift, w_t)
    return wb.reshape(9, W * C_in, W * C_out)


def _pick_tile_d(D, H, Wci, Wco, max_tile_d):
    """Largest depth tile whose double-buffered blocks fit a VMEM budget.

    Keeps 2 x (bf16 input window + f32 output tile) under ~12 MiB so the
    kernel stays inside the default scoped-VMEM limit on every generation
    (and v7x's 64 MiB physical VMEM) without vmem_limit_bytes overrides.
    """
    budget = 12 * 1024 * 1024
    td = D if max_tile_d is None else max(1, min(D, int(max_tile_d)))

    def blk_bytes(t):
        return 2 * ((t + 2) * (H + 2) * Wci * 2 + t * H * Wco * 4)

    while td > 1 and blk_bytes(td) > budget:
        td = -(-td // 2)
    return td


def conv3d_cd(x, weight, theta=0.7, *, max_tile_d=None):
    """x: (N, C_in, D, H, W) float32 (NCDHW); weight: (C_out, C_in, 3, 3, 3)."""
    N, C_in, D, H, W = x.shape
    C_out = weight.shape[0]
    Wci, Wco = W * C_in, W * C_out

    # Layout preconditions (perf, not correctness): keep them explicit so the
    # kernel never silently falls off the fast path.
    assert H % 8 == 0, "H must be a multiple of 8 (sublane-aligned H tiles)"
    assert Wco % 128 == 0, "W*C_out must be a multiple of 128 (full-lane stores)"
    assert Wci <= 256, ("banded-weight contraction capped at W*C_in <= 256; "
                        "tile W with a halo for larger shapes")
    # TODO(synk): W-tiling with a 1-element halo (contract over 3*C_in per
    # (kd,kh) tap) for W*C_in > 256.

    TD = _pick_tile_d(D, H, Wci, Wco, max_tile_d)
    DT = -(-D // TD)
    D_pad = DT * TD

    # ---- glue: layout / padding / weight prep (plain JAX, fused passes) ----
    # TODO(synk): in a multi-layer network keep activations in this
    # lane-packed (N, D, H, W*C) layout between layers instead of converting
    # from/to NCDHW around every conv.
    x_ndhwc = jnp.transpose(x, (0, 2, 3, 4, 1)).astype(jnp.bfloat16)  # NDHWC
    # Pad D (front 1, back 1 + tile remainder) and H; W padding is absorbed
    # by the banded weight matrices.
    x_padded = jnp.pad(
        x_ndhwc, ((0, 0), (1, 1 + (D_pad - D)), (1, 1), (0, 0), (0, 0)))
    x_lanes = x_padded.reshape(N, D_pad + 2, H + 2, Wci)      # lane = (w, ci)

    if DT == 1:
        x_tiles = x_lanes[:, None]                            # (N, 1, D+2, H+2, Wci)
    else:
        # Explicit haloed depth windows (2-row overlap) so plain Blocked
        # BlockSpecs can tile D; overhead is 2/TD extra HBM rows.
        x_tiles = jnp.stack(
            [x_lanes[:, t * TD: t * TD + TD + 2] for t in range(DT)], axis=1)

    wb = _prep_banded_weights(weight, theta, W).astype(jnp.bfloat16)

    kernel = functools.partial(_conv3d_cd_kernel, TD=TD, H=H, Wci=Wci, Wco=Wco)

    out_tiles = pl.pallas_call(
        kernel,
        out_shape=jax.ShapeDtypeStruct((N, DT, TD, H, Wco), jnp.float32),
        grid=(N, DT),
        in_specs=[
            pl.BlockSpec((None, None, TD + 2, H + 2, Wci),
                         lambda n, t: (n, t, 0, 0, 0)),
            pl.BlockSpec((9, Wci, Wco), lambda n, t: (0, 0, 0)),
        ],
        out_specs=pl.BlockSpec((None, None, TD, H, Wco),
                               lambda n, t: (n, t, 0, 0, 0)),
        compiler_params=pltpu.CompilerParams(
            dimension_semantics=("parallel", "parallel")),
    )(x_tiles, wb)

    out = out_tiles.reshape(N, D_pad, H, W, C_out)[:, :D]     # drop tile padding
    return jnp.transpose(out, (0, 4, 1, 2, 3)).astype(x.dtype)  # NCDHW


def _reference(x, weight, theta):
    out_normal = lax.conv_general_dilated(
        x, weight, window_strides=(1, 1, 1),
        padding=((1, 1), (1, 1), (1, 1)),
        dimension_numbers=("NCDHW", "OIDHW", "NCDHW"))
    if math.fabs(theta - 0.0) < 1e-8:
        return out_normal
    kdiff = weight[:, :, 0].sum(axis=(2, 3)) + weight[:, :, 2].sum(axis=(2, 3))
    out_diff = jnp.einsum("ncdhw,oc->nodhw", x, kdiff)
    return out_normal - theta * out_diff


if __name__ == "__main__":
    key = jax.random.PRNGKey(0)
    kx, kw = jax.random.split(key)

    N, C_in, C_out, D, H, W = 2, 4, 8, 8, 16, 16
    theta = 0.7

    x = jax.random.normal(kx, (N, C_in, D, H, W), dtype=jnp.float32)
    # Deterministic weight init (kaiming-ish scale), shape from nn.Conv3d.
    fan_in = C_in * 3 * 3 * 3
    weight = jax.random.normal(kw, (C_out, C_in, 3, 3, 3),
                               dtype=jnp.float32) / jnp.sqrt(fan_in)

    ref = jax.block_until_ready(_reference(x, weight, theta))

    # Default path: one fat grid step per sample (TD = D, DT = 1).
    out = jax.block_until_ready(conv3d_cd(x, weight, theta))
    # bf16 inputs/weights with f32 accumulation => loosened tolerance.
    if not jnp.allclose(out, ref, rtol=4e-2, atol=4e-2):
        raise AssertionError("Pallas Conv3d_cd (fat-step) does not match reference")

    # Depth-tiled path: exercises the haloed D-tiling used at v7x-scale shapes
    # (grid = (N, 2) here).
    out_tiled = jax.block_until_ready(conv3d_cd(x, weight, theta, max_tile_d=4))
    if not jnp.allclose(out_tiled, ref, rtol=4e-2, atol=4e-2):
        raise AssertionError("Pallas Conv3d_cd (D-tiled) does not match reference")

    print("KERNEL_OK")
</pallas_src>

<mosaic_0001>
module attributes {stable_mosaic.version = 11 : i64} {
  func.func @_conv3d_cd_kernel(%arg0: i32, %arg1: i32, %arg2: memref<1x1x10x18x64xbf16, #tpu.memory_space<vmem>>, %arg3: memref<9x64x128xbf16, #tpu.memory_space<vmem>>, %arg4: memref<1x1x8x16x128xf32, #tpu.memory_space<vmem>>) attributes {dimension_semantics = [#tpu.dimension_semantics<parallel>, #tpu.dimension_semantics<parallel>], iteration_bounds = array<i64: 2, 1>, scalar_prefetch = 0 : i64, scratch_operands = 0 : i64, tpu.core_type = #tpu.core_type<tc>, window_params = [{transform_indices = @transform_0, window_bounds = array<i64: 1, 1, 10, 18, 64>}, {pipeline_mode = #tpu.pipeline_mode<synchronous>, transform_indices = @transform_1, window_bounds = array<i64: 9, 64, 128>}, {transform_indices = @transform_2, window_bounds = array<i64: 1, 1, 8, 16, 128>}]} {
    %cst = arith.constant 0.000000e+00 : f32
    %0 = vector.broadcast %cst : f32 to vector<128x128xf32>
    %cst_0 = arith.constant 0.000000e+00 : f32
    %1 = vector.broadcast %cst_0 : f32 to vector<128x128xf32>
    %c0 = arith.constant 0 : index
    %c0_1 = arith.constant 0 : index
    %c0_2 = arith.constant 0 : index
    %c0_3 = arith.constant 0 : index
    %c0_4 = arith.constant 0 : index
    %2 = vector.load %arg2[%c0, %c0_1, %c0_2, %c0_3, %c0_4] : memref<1x1x10x18x64xbf16, #tpu.memory_space<vmem>>, vector<1x1x10x16x64xbf16>
    %3 = vector.shape_cast %2 : vector<1x1x10x16x64xbf16> to vector<10x16x64xbf16>
    %4 = vector.extract_strided_slice %3 {offsets = [0, 0, 0], sizes = [8, 16, 64], strides = [1, 1, 1]} : vector<10x16x64xbf16> to vector<8x16x64xbf16>
    %5 = vector.shape_cast %4 : vector<8x16x64xbf16> to vector<128x64xbf16>
    %c0_5 = arith.constant 0 : index
    %c0_6 = arith.constant 0 : index
    %c0_7 = arith.constant 0 : index
    %6 = vector.load %arg3[%c0_5, %c0_6, %c0_7] : memref<9x64x128xbf16, #tpu.memory_space<vmem>>, vector<1x64x128xbf16>
    %7 = vector.shape_cast %6 : vector<1x64x128xbf16> to vector<64x128xbf16>
    %cst_8 = arith.constant dense<0.000000e+00> : vector<128x128xf32>
    %8 = tpu.matmul %5, %7, %cst_8 {dimension_numbers = #tpu.dot_dimension_numbers<[1], [0], [0], [1], [0, 0, 1, 1], [], []>} : vector<128x64xbf16>, vector<64x128xbf16>, vector<128x128xf32> -> vector<128x128xf32>
    %9 = arith.addf %0, %8 : vector<128x128xf32>
    %10 = vector.extract_strided_slice %3 {offsets = [1, 0, 0], sizes = [8, 16, 64], strides = [1, 1, 1]} : vector<10x16x64xbf16> to vector<8x16x64xbf16>
    %11 = vector.shape_cast %10 : vector<8x16x64xbf16> to vector<128x64xbf16>
    %c3 = arith.constant 3 : index
    %c0_9 = arith.constant 0 : index
    %c0_10 = arith.constant 0 : index
    %12 = vector.load %arg3[%c3, %c0_9, %c0_10] : memref<9x64x128xbf16, #tpu.memory_space<vmem>>, vector<1x64x128xbf16>
    %13 = vector.shape_cast %12 : vector<1x64x128xbf16> to vector<64x128xbf16>
    %cst_11 = arith.constant dense<0.000000e+00> : vector<128x128xf32>
    %14 = tpu.matmul %11, %13, %cst_11 {dimension_numbers = #tpu.dot_dimension_numbers<[1], [0], [0], [1], [0, 0, 1, 1], [], []>} : vector<128x64xbf16>, vector<64x128xbf16>, vector<128x128xf32> -> vector<128x128xf32>
    %15 = arith.addf %1, %14 : vector<128x128xf32>
    %16 = vector.extract_strided_slice %3 {offsets = [2, 0, 0], sizes = [8, 16, 64], strides = [1, 1, 1]} : vector<10x16x64xbf16> to vector<8x16x64xbf16>
    %17 = vector.shape_cast %16 : vector<8x16x64xbf16> to vector<128x64xbf16>
    %c6 = arith.constant 6 : index
    %c0_12 = arith.constant 0 : index
    %c0_13 = arith.constant 0 : index
    %18 = vector.load %arg3[%c6, %c0_12, %c0_13] : memref<9x64x128xbf16, #tpu.memory_space<vmem>>, vector<1x64x128xbf16>
    %19 = vector.shape_cast %18 : vector<1x64x128xbf16> to vector<64x128xbf16>
    %cst_14 = arith.constant dense<0.000000e+00> : vector<128x128xf32>
    %20 = tpu.matmul %17, %19, %cst_14 {dimension_numbers = #tpu.dot_dimension_numbers<[1], [0], [0], [1], [0, 0, 1, 1], [], []>} : vector<128x64xbf16>, vector<64x128xbf16>, vector<128x128xf32> -> vector<128x128xf32>
    %21 = arith.addf %9, %20 : vector<128x128xf32>
    %c0_15 = arith.constant 0 : index
    %c0_16 = arith.constant 0 : index
    %c0_17 = arith.constant 0 : index
    %c1 = arith.constant 1 : index
    %c0_18 = arith.constant 0 : index
    %22 = vector.load %arg2[%c0_15, %c0_16, %c0_17, %c1, %c0_18] : memref<1x1x10x18x64xbf16, #tpu.memory_space<vmem>>, vector<1x1x10x16x64xbf16>
    %23 = vector.shape_cast %22 : vector<1x1x10x16x64xbf16> to vector<10x16x64xbf16>
    %24 = vector.extract_strided_slice %23 {offsets = [0, 0, 0], sizes = [8, 16, 64], strides = [1, 1, 1]} : vector<10x16x64xbf16> to vector<8x16x64xbf16>
    %25 = vector.shape_cast %24 : vector<8x16x64xbf16> to vector<128x64xbf16>
    %c1_19 = arith.constant 1 : index
    %c0_20 = arith.constant 0 : index
    %c0_21 = arith.constant 0 : index
    %26 = vector.load %arg3[%c1_19, %c0_20, %c0_21] : memref<9x64x128xbf16, #tpu.memory_space<vmem>>, vector<1x64x128xbf16>
    %27 = vector.shape_cast %26 : vector<1x64x128xbf16> to vector<64x128xbf16>
    %cst_22 = arith.constant dense<0.000000e+00> : vector<128x128xf32>
    %28 = tpu.matmul %25, %27, %cst_22 {dimension_numbers = #tpu.dot_dimension_numbers<[1], [0], [0], [1], [0, 0, 1, 1], [], []>} : vector<128x64xbf16>, vector<64x128xbf16>, vector<128x128xf32> -> vector<128x128xf32>
    %29 = arith.addf %15, %28 : vector<128x128xf32>
    %30 = vector.extract_strided_slice %23 {offsets = [1, 0, 0], sizes = [8, 16, 64], strides = [1, 1, 1]} : vector<10x16x64xbf16> to vector<8x16x64xbf16>
    %31 = vector.shape_cast %30 : vector<8x16x64xbf16> to vector<128x64xbf16>
    %c4 = arith.constant 4 : index
    %c0_23 = arith.constant 0 : index
    %c0_24 = arith.constant 0 : index
    %32 = vector.load %arg3[%c4, %c0_23, %c0_24] : memref<9x64x128xbf16, #tpu.memory_space<vmem>>, vector<1x64x128xbf16>
    %33 = vector.shape_cast %32 : vector<1x64x128xbf16> to vector<64x128xbf16>
    %cst_25 = arith.constant dense<0.000000e+00> : vector<128x128xf32>
    %34 = tpu.matmul %31, %33, %cst_25 {dimension_numbers = #tpu.dot_dimension_numbers<[1], [0], [0], [1], [0, 0, 1, 1], [], []>} : vector<128x64xbf16>, vector<64x128xbf16>, vector<128x128xf32> -> vector<128x128xf32>
    %35 = arith.addf %21, %34 : vector<128x128xf32>
    %36 = vector.extract_strided_slice %23 {offsets = [2, 0, 0], sizes = [8, 16, 64], strides = [1, 1, 1]} : vector<10x16x64xbf16> to vector<8x16x64xbf16>
    %37 = vector.shape_cast %36 : vector<8x16x64xbf16> to vector<128x64xbf16>
    %c7 = arith.constant 7 : index
    %c0_26 = arith.constant 0 : index
    %c0_27 = arith.constant 0 : index
    %38 = vector.load %arg3[%c7, %c0_26, %c0_27] : memref<9x64x128xbf16, #tpu.memory_space<vmem>>, vector<1x64x128xbf16>
    %39 = vector.shape_cast %38 : vector<1x64x128xbf16> to vector<64x128xbf16>
    %cst_28 = arith.constant dense<0.000000e+00> : vector<128x128xf32>
    %40 = tpu.matmul %37, %39, %cst_28 {dimension_numbers = #tpu.dot_dimension_numbers<[1], [0], [0], [1], [0, 0, 1, 1], [], []>} : vector<128x64xbf16>, vector<64x128xbf16>, vector<128x128xf32> -> vector<128x128xf32>
    %41 = arith.addf %29, %40 : vector<128x128xf32>
    %c0_29 = arith.constant 0 : index
    %c0_30 = arith.constant 0 : index
    %c0_31 = arith.constant 0 : index
    %c2 = arith.constant 2 : index
    %c0_32 = arith.constant 0 : index
    %42 = vector.load %arg2[%c0_29, %c0_30, %c0_31, %c2, %c0_32] : memref<1x1x10x18x64xbf16, #tpu.memory_space<vmem>>, vector<1x1x10x16x64xbf16>
    %43 = vector.shape_cast %42 : vector<1x1x10x16x64xbf16> to vector<10x16x64xbf16>
    %44 = vector.extract_strided_slice %43 {offsets = [0, 0, 0], sizes = [8, 16, 64], strides = [1, 1, 1]} : vector<10x16x64xbf16> to vector<8x16x64xbf16>
    %45 = vector.shape_cast %44 : vector<8x16x64xbf16> to vector<128x64xbf16>
    %c2_33 = arith.constant 2 : index
    %c0_34 = arith.constant 0 : index
    %c0_35 = arith.constant 0 : index
    %46 = vector.load %arg3[%c2_33, %c0_34, %c0_35] : memref<9x64x128xbf16, #tpu.memory_space<vmem>>, vector<1x64x128xbf16>
    %47 = vector.shape_cast %46 : vector<1x64x128xbf16> to vector<64x128xbf16>
    %cst_36 = arith.constant dense<0.000000e+00> : vector<128x128xf32>
    %48 = tpu.matmul %45, %47, %cst_36 {dimension_numbers = #tpu.dot_dimension_numbers<[1], [0], [0], [1], [0, 0, 1, 1], [], []>} : vector<128x64xbf16>, vector<64x128xbf16>, vector<128x128xf32> -> vector<128x128xf32>
    %49 = arith.addf %35, %48 : vector<128x128xf32>
    %50 = vector.extract_strided_slice %43 {offsets = [1, 0, 0], sizes = [8, 16, 64], strides = [1, 1, 1]} : vector<10x16x64xbf16> to vector<8x16x64xbf16>
    %51 = vector.shape_cast %50 : vector<8x16x64xbf16> to vector<128x64xbf16>
    %c5 = arith.constant 5 : index
    %c0_37 = arith.constant 0 : index
    %c0_38 = arith.constant 0 : index
    %52 = vector.load %arg3[%c5, %c0_37, %c0_38] : memref<9x64x128xbf16, #tpu.memory_space<vmem>>, vector<1x64x128xbf16>
    %53 = vector.shape_cast %52 : vector<1x64x128xbf16> to vector<64x128xbf16>
    %cst_39 = arith.constant dense<0.000000e+00> : vector<128x128xf32>
    %54 = tpu.matmul %51, %53, %cst_39 {dimension_numbers = #tpu.dot_dimension_numbers<[1], [0], [0], [1], [0, 0, 1, 1], [], []>} : vector<128x64xbf16>, vector<64x128xbf16>, vector<128x128xf32> -> vector<128x128xf32>
    %55 = arith.addf %41, %54 : vector<128x128xf32>
    %56 = vector.extract_strided_slice %43 {offsets = [2, 0, 0], sizes = [8, 16, 64], strides = [1, 1, 1]} : vector<10x16x64xbf16> to vector<8x16x64xbf16>
    %57 = vector.shape_cast %56 : vector<8x16x64xbf16> to vector<128x64xbf16>
    %c8 = arith.constant 8 : index
    %c0_40 = arith.constant 0 : index
    %c0_41 = arith.constant 0 : index
    %58 = vector.load %arg3[%c8, %c0_40, %c0_41] : memref<9x64x128xbf16, #tpu.memory_space<vmem>>, vector<1x64x128xbf16>
    %59 = vector.shape_cast %58 : vector<1x64x128xbf16> to vector<64x128xbf16>
    %cst_42 = arith.constant dense<0.000000e+00> : vector<128x128xf32>
    %60 = tpu.matmul %57, %59, %cst_42 {dimension_numbers = #tpu.dot_dimension_numbers<[1], [0], [0], [1], [0, 0, 1, 1], [], []>} : vector<128x64xbf16>, vector<64x128xbf16>, vector<128x128xf32> -> vector<128x128xf32>
    %61 = arith.addf %49, %60 : vector<128x128xf32>
    %62 = arith.addf %61, %55 : vector<128x128xf32>
    %63 = vector.shape_cast %62 : vector<128x128xf32> to vector<8x16x128xf32>
    %c0_43 = arith.constant 0 : index
    %c0_44 = arith.constant 0 : index
    %c0_45 = arith.constant 0 : index
    %c0_46 = arith.constant 0 : index
    %c0_47 = arith.constant 0 : index
    %64 = vector.load %arg4[%c0_43, %c0_44, %c0_45, %c0_46, %c0_47] : memref<1x1x8x16x128xf32, #tpu.memory_space<vmem>>, vector<1x1x8x16x128xf32>
    %65 = vector.shape_cast %64 : vector<1x1x8x16x128xf32> to vector<8x16x128xf32>
    %66 = vector.shape_cast %63 : vector<8x16x128xf32> to vector<1x1x8x16x128xf32>
    tpu.vector_store %arg4[%c0_43, %c0_44, %c0_45, %c0_46, %c0_47], %66 {strides = array<i32>} : memref<1x1x8x16x128xf32, #tpu.memory_space<vmem>>, vector<1x1x8x16x128xf32>,
    return
  }
  func.func @transform_0(%arg0: i32, %arg1: i32) -> (i32, i32, i32, i32, i32) {
    %c0_i32 = arith.constant 0 : i32
    %c0_i32_0 = arith.constant 0 : i32
    %c0_i32_1 = arith.constant 0 : i32
    %c0_i32_2 = arith.constant 0 : i32
    return %arg0, %arg1, %c0_i32, %c0_i32_0, %c0_i32_1 : i32, i32, i32, i32, i32
  }
  func.func @transform_1(%arg0: i32, %arg1: i32) -> (i32, i32, i32) {
    %c0_i32 = arith.constant 0 : i32
    %c0_i32_0 = arith.constant 0 : i32
    %c0_i32_1 = arith.constant 0 : i32
    %c0_i32_2 = arith.constant 0 : i32
    return %c0_i32, %c0_i32_0, %c0_i32_1 : i32, i32, i32
  }
  func.func @transform_2(%arg0: i32, %arg1: i32) -> (i32, i32, i32, i32, i32) {
    %c0_i32 = arith.constant 0 : i32
    %c0_i32_0 = arith.constant 0 : i32
    %c0_i32_1 = arith.constant 0 : i32
    %c0_i32_2 = arith.constant 0 : i32
    return %arg0, %arg1, %c0_i32, %c0_i32_0, %c0_i32_1 : i32, i32, i32, i32, i32
  }
}

</mosaic_0001>

<bundles_post_ra>
// kernel: tpu_custom_call.1
= control target key start
LH: loop header
LB: loop body
LE: loop exit
PB: predicated region body
PF: predicated region fallthrough
CT: control target
= control target key end

     0   :  { %7 = vsyncpa [#allocation3], 0  ;;  %s3040_s0 = inlined_call_operand.vmem [shape: bf16[2,1,10,18,64], index: 0, kind: input, shape index: {}]   ;;  %s3041_s1 = inlined_call_operand.vmem [shape: bf16[9,64,128], index: 1, kind: input, shape index: {}]   ;;  %s3042_s2 = inlined_call_operand.hbm [shape: f32[2,1,8,16,128], index: 2, kind: output, shape index: {}]  }
   0x1   :  { %9 = vsyncpa [#allocation3 + $0x1], 0  ;;  %s2283_s9 = smov 0   ;;  %s2285_s10 = smov 0  }
   0x2   :  { %s2287_s11 = smov 0   ;;  %s2289_s12 = smov 0  }
   0x3   :  { %s2291_s13 = smov 0   ;;  %s2293_s14 = smov 0  }
   0x4 LB: > { %s1727_s15 = sadd.s32 4294967295, %s2264_s14   ;;  %s1728_s16 = sadd.s32 4294967294, %s2264_s14   ;;  %s2264_s14 = sphi %s2293_s14, %s15_s14   ;;  %s2260_s13 = sphi %s2291_s13, %s3053_s13   ;;  %s2256_s12 = sphi %s2289_s12, %s3052_s12   ;;  %s2252_s11 = sphi %s2287_s11, %s3051_s11   ;;  %s2248_s10 = sphi %s2285_s10, %s3050_s10   ;;  %s2244_s9 = sphi %s2283_s9, %s3049_s9  }
   0x5   : > { %s27_s17 = sadd.s32 1, %s2260_s13  ;;  %s85_s18 = sadd.s32 1, %s2252_s11 }
   0x6   : > { %p29_p0 = scmp.ge.s32.totalorder %s27_s17, 2  ;;  %p95_p1 = scmp.ne.s32.totalorder %s2252_s11, %s2248_s10 }
   0x7   : > { %p96_p2 = scmp.eq.s32.totalorder %s1727_s15, 1  ;;  %p101_p3 = scmp.ne.s32.totalorder %s2248_s10, %s2244_s9 }
   0x8   : > { %s3055_s17 = smov (%p29_p0, %s27_s17), 0  ;;  %p102_p5 = scmp.eq.s32.totalorder %s1728_s16, 1 }
   0x9   : > { %p2323_p4 = por %p96_p2, %p95_p1  ;;  %s80_s20 = ssub.s32 %s2260_s13, %s3055_s17 }
   0xa   : > { %p1731_p6 = scmp.ge.s32.totalorder %s2264_s14, 1  ;;  %p83_p7 = scmp.eq.s32.totalorder %s80_s20, 0 }
   0xb   : > { %p2330_p8 = por %p102_p5, %p101_p3  ;;  %p135_p9 = scmp.lt.s32.totalorder %s2264_s14, 3 }
   0xc   : > { %s2336_s22 = scalar_select %p83_p7, %s2252_s11, %s85_s18  }
   0xd   : > { %p136_p10 = pnand %p1731_p6, %p135_p9 }
   0xe   : > { %p161_p11 = scmp.lt.s32.totalorder (!%p136_p10), %s2256_s12, 1  ;;  %s2115_s5 = sshll.u32 (!%p136_p10), %s2256_s12, 7 }
   0xf   : > { %139 = sbr.rel (%p136_p10) target bundleno = 459 (0x1cb), region = 28  ;;  %s1641_s15 = scalar_lea.hbm (!%p136_p10), %s3042_s2, %s2115_s5 }
  0x10   : > { %s1644_s18 = sshll.u32 (!%p136_p10), %s1641_s15, 4  ;;  %s2206_s26 = scalar_lea.hbm (!%p136_p10), %s3042_s2, 256  ;;  %s1645_s18 = int_to_ptr.hbm [resolvable:$true] %s1644_s18 }
  0x11   : > { %s2200_s20 = sshra.s32 (!%p136_p10), %s1645_s18, 4  ;;  %s2201_s20 = int_to_ptr.hbm [resolvable:$true] %s2200_s20 }
  0x12   : > { %s2202_s23 = scalar_lea.hbm (!%p136_p10), %s2201_s20, 128  ;;  %p2207_p1 = scmp.lt.s32.totalorder (!%p136_p10), %s2201_s20, %s3042_s2 }
  0x13   : > { %p2203_p12 = scmp.ne.s32.totalorder (!%p136_p10), %s2201_s20, %s2202_s23  ;;  %p2208_p2 = scmp.lt.s32.totalorder (!%p136_p10), %s2206_s26, %s2202_s23 }
  0x14   : > { %v2090_v0 = vld [vmem:[%s3041_s1 + $0xd8] sm:$0xff]  ;;  %v2089_v1 = vld [vmem:[%s3041_s1 + $0xd0] sm:$0xff]  ;;  %s162_s27 = scalar_select %p161_p11, %s2256_s12, 1  ;;  %v2088_v2 = vld [vmem:[%s3041_s1 + $0xc8] sm:$0xff]  ;;  %vm281_vm0 = vcmask 523264   ;;  %vm1162_vm4 = vcmask 1042432  }
  0x15   : > { %310 = vmatpush.bf16.msra.mxu0 %v2090_v0  ;;  %2116 = vmatpush.bf16.msra.mxu1 %v2090_v0  ;;  %v2087_v3 = vld [vmem:[%s3041_s1 + $0xc0] sm:$0xff]  ;;  %v2094_v4 = vld [vmem:[%s3041_s1 + $0x38] sm:$0xff]  ;;  %v2093_v12 = vld [vmem:[%s3041_s1 + $0x30] sm:$0xff]  ;;  %vm474_vm1 = vsmask.f32 3328  ;;  %vm1163_vm5 = vcmask 1046532   ;;  %p2204_p13 = pnand %p2203_p12, %p2323_p4  ;;  %p2209_p3 = por %p2208_p2, %p2207_p1 }
  0x16   : > { %2117 = vmatpush.bf16.msra.mxu2 %v2090_v0  ;;  %2118 = vmatpush.bf16.msra.mxu3 %v2090_v0  ;;  %s2128_s30 = smul.u32 120, %s162_s27  ;;  %v2086_v5 = vld [vmem:[%s3041_s1 + $0x78] sm:$0xff]  ;;  %v2085_v13 = vld [vmem:[%s3041_s1 + $0x70] sm:$0xff]  ;;  %v2092_v20 = vld [vmem:[%s3041_s1 + $0x28] sm:$0xff]  ;;  %vm475_vm2 = vsmask.f32 7440 }
  0x17   : > { %v2082_v10 = vld [vmem:[%s3041_s1 + $0x18] sm:$0xff]  ;;  %v2081_v14 = vld [vmem:[%s3041_s1 + $0x10] sm:$0xff]  ;;  %v2084_v21 = vld [vmem:[%s3041_s1 + $0x68] sm:$0xff]  ;;  %p2205_p0 = pneg %p2204_p13 }
  0x18   : > { %s2355_s7 = scalar_lea.vmem %s3040_s0, %s2128_s30  ;;  %v2098_v11 = vld [vmem:[%s3041_s1 + $0x98] sm:$0xff]  ;;  %v2097_v17 = vld [vmem:[%s3041_s1 + $0x90] sm:$0xff]  ;;  %v2080_v30 = vld [vmem:[%s3041_s1 + $0x8] sm:$0xff] }
  0x19   : > { %311 = vmatpush.bf16.msra.mxu0 %v2089_v1  ;;  %2119 = vmatpush.bf16.msra.mxu1 %v2089_v1  ;;  %v2364_v6 = vld [vmem:[%s2355_s7 + $0x18] sm:$0xff]  ;;  %v2367_v7 = vld [vmem:[%s2355_s7 + $0x30] sm:$0xff]  ;;  %v2370_v8 = vld [vmem:[%s2355_s7 + $0x48] sm:$0xff]  ;;  %p2210_p5 = pnand %p2209_p3, %p2205_p0 }
  0x1a   : > { %2120 = vmatpush.bf16.msra.mxu2 %v2089_v1  ;;  %2121 = vmatpush.bf16.msra.mxu3 %v2089_v1  ;;  %v2373_v9 = vld [vmem:[%s2355_s7 + $0x60] sm:$0xff]  ;;  %v447_v18 = vld [vmem:[%s2355_s7 + $0xc] sm:$0xf]  ;;  %v2407_v19 = vld [vmem:[%s2355_s7 + $0x10] sm:$0xf] }
  0x1b   : > { %v444_v15 = vld [vmem:[%s2355_s7] sm:$0xf]  ;;  %v2400_v16 = vld [vmem:[%s2355_s7 + $0x4] sm:$0xf]  ;;  %v502_v26 = vshrl.u32 %v447_v18, 16  ;;  %v505_v27 = vshll.u32 %v447_v18, 16  ;;  %vm2474_vm3 = vmor %vm474_vm1, %vm475_vm2 }
  0x1c   : > { %v478_v22 = vshrl.u32 %v444_v15, 16  ;;  %v481_v23 = vshll.u32 %v444_v15, 16  ;;  %v487_v24 = vshll.u32 %v2400_v16, 16  ;;  %v491_v25 = vshrl.u32 %v2400_v16, 16  ;;  %v2096_v31 = vld [vmem:[%s3041_s1 + $0x88] sm:$0xff]  ;;  %v2091_v32 = vld [vmem:[%s3041_s1 + $0x20] sm:$0xff]  ;;  %vm2672_vm6 = vmor %vm1162_vm4, %vm1163_vm5 }
  0x1d   : > { %312 = vmatpush.bf16.msra.mxu0 %v2088_v2  ;;  %2122 = vmatpush.bf16.msra.mxu1 %v2088_v2  ;;  %v511_v28 = vshll.u32 %v2407_v19, 16  ;;  %v515_v29 = vshrl.u32 %v2407_v19, 16  ;;  %v2083_v33 = vld [vmem:[%s3041_s1 + $0x60] sm:$0xff]  ;;  %v2106_v38 = vld [vmem:[%s3041_s1 + $0x58] sm:$0xff]  ;;  %v2438_v40 = vld [vmem:[%s2355_s7 + $0x8] sm:$0x1] }
  0x1e   : > { %2123 = vmatpush.bf16.msra.mxu2 %v2088_v2  ;;  %2124 = vmatpush.bf16.msra.mxu3 %v2088_v2  ;;  %v480_v34 = vrot.slane %v478_v22, 4  ;;  %v483_v35 = vrot.slane %v481_v23, 5  ;;  %v489_v36 = vrot.slane %v487_v24, 5  ;;  %v493_v37 = vrot.slane %v491_v25, 4  ;;  %v2110_v39 = vld [vmem:[%s3041_s1 + $0xb8] sm:$0xff]  ;;  %v2079_v45 = vld [vmem:[%s3041_s1] sm:$0xff] }
  0x1f   : > { %v504_v41 = vrot.slane %v502_v26, 4  ;;  %v507_v42 = vrot.slane %v505_v27, 5  ;;  %v513_v43 = vrot.slane %v511_v28, 5  ;;  %v517_v44 = vrot.slane %v515_v29, 4  ;;  %v2095_v46 = vld [vmem:[%s3041_s1 + $0x80] sm:$0xff]  ;;  %v2102_v48 = vld [vmem:[%s3041_s1 + $0xf8] sm:$0xff] }
  0x20   : > { %v2447_v47 = vld [vmem:[%s2355_s7 + $0x14] sm:$0x1]  ;;  %v2114_v49 = vld [vmem:[%s3041_s1 + $0x118] sm:$0xff]  ;;  %v2456_v50 = vld [vmem:[%s2355_s7 + $0x24] sm:$0xff]  ;;  %v484_v52 = vor.u32 %v483_v35, %v480_v34  ;;  %v494_v53 = vor.u32 %v493_v37, %v489_v36  ;;  %v497_v54 = vshll.u32 %v2438_v40, 16 }
  0x21   : > { %313 = vmatpush.bf16.msra.mxu0 %v2087_v3  ;;  %2125 = vmatpush.bf16.msra.mxu1 %v2087_v3  ;;  %v2459_v51 = vld [vmem:[%s2355_s7 + $0x3c] sm:$0xff]  ;;  %v2463_v55 = vld [vmem:[%s2355_s7 + $0x54] sm:$0xff]  ;;  %v2078_v56 = vld [vmem:[%s2355_s7 + $0x6c] sm:$0xff]  ;;  %v508_v57 = vor.u32 %v507_v42, %v504_v41  ;;  %v518_v58 = vor.u32 %v517_v44, %v513_v43  ;;  %v521_v59 = vshll.u32 %v2447_v47, 16 }
  0x22   : > { %2126 = vmatpush.bf16.msra.mxu2 %v2087_v3  ;;  %2127 = vmatpush.bf16.msra.mxu3 %v2087_v3  ;;  %v485_v60 = vrot.slane %v484_v52, 4  ;;  %v495_v61 = vrot.slane %v494_v53, 4  ;;  %v499_v62 = vrot.slane %v497_v54, 5  ;;  %v450_v3 = vld [vmem:[%s2355_s7 + $0x18] sm:$0xf]  ;;  %v2069_v28 = vld [vmem:[%s2355_s7] sm:$0xff] }
  0x23   : > { %v509_v0 = vrot.slane %v508_v57, 4  ;;  %v519_v1 = vrot.slane %v518_v58, 4  ;;  %v523_v2 = vrot.slane %v521_v59, 5  ;;  %v2493_v27 = vld [vmem:[%s2355_s7 + $0x20] sm:$0x1]  ;;  %v2105_v41 = vld [vmem:[%s3041_s1 + $0x50] sm:$0xff] }
  0x24   : > { %1798 = vmatmul.msk.bf16.vlgmr.msra.gmra.mxu0 %vm281_vm0, %v2364_v6  ;;  %1800 = vmatmul.msk.bf16.vlgmr.msra.gmra.mxu1 %vm281_vm0, %v2367_v7  ;;  %v545_v34 = vshll.u32 %v2493_v27, 16  ;;  %v453_v35 = vld [vmem:[%s2355_s7 + $0x24] sm:$0xf]  ;;  %v2109_v42 = vld [vmem:[%s3041_s1 + $0xb0] sm:$0xff] }
  0x25   : > { %1802 = vmatmul.msk.bf16.vlgmr.msra.gmra.mxu2 %vm281_vm0, %v2370_v8  ;;  %1804 = vmatmul.msk.bf16.vlgmr.msra.gmra.mxu3 %vm281_vm0, %v2373_v9  ;;  %v2113_v44 = vld [vmem:[%s3041_s1 + $0x110] sm:$0xff] }
  0x26   : > { %754 = vmatpush.bf16.msrb.mxu2 %v2094_v4  ;;  %827 = vmatpush.bf16.msrb.mxu3 %v2086_v5  ;;  %v2480_v4 = vld [vmem:[%s2355_s7 + $0x1c] sm:$0xf]  ;;  %v490_v5 = vsel %vm2474_vm3, %v485_v60, %v489_v36  ;;  %v2502_v36 = vld [vmem:[%s2355_s7 + $0x28] sm:$0xf] }
  0x27   : > { %399 = vmatpush.bf16.msrb.mxu1 %v2082_v10  ;;  %939 = vmatpush.bf16.msrb.mxu0 %v2098_v11  ;;  %v500_v10 = vsel %vm2474_vm3, %v495_v61, %v499_v62  ;;  %v526_v11 = vshrl.u32 %v450_v3, 16  ;;  %v535_v15 = vshll.u32 %v2480_v4, 16  ;;  %v678_v18 = vunpack.c.l.b16 %v490_v5  ;;  %v2525_v61 = vld [vmem:[%s2355_s7 + $0x2c] sm:$0x1] }
  0x29   : > { %v528_v23 = vrot.slane %v526_v11, 4  ;;  %v537_v25 = vrot.slane %v535_v15, 5  ;;  %v456_v11 = vld [vmem:[%s2355_s7 + $0x30] sm:$0xf] }
  0x2a   : > { %755 = vmatpush.bf16.msrb.mxu2 %v2093_v12  ;;  %828 = vmatpush.bf16.msrb.mxu3 %v2085_v13  ;;  %v529_v12 = vshll.u32 %v450_v3, 16  ;;  %v514_v13 = vsel %vm2474_vm3, %v509_v0, %v513_v43  ;;  %v2101_v43 = vld [vmem:[%s3041_s1 + $0xf0] sm:$0xff]  ;;  %v574_v15 = vshrl.u32 %v456_v11, 16 }
  0x2b   : > { %400 = vmatpush.bf16.msrb.mxu1 %v2081_v14  ;;  %940 = vmatpush.bf16.msrb.mxu0 %v2097_v17  ;;  %v524_v14 = vsel %vm2474_vm3, %v519_v1, %v523_v2  ;;  %v539_v17 = vshrl.u32 %v2480_v4, 16  ;;  %v569_v1 = vshll.u32 %v2525_v61, 16 }
  0x2c   : > { %v681_v22 = vunpack.c.l.b16 %v524_v14  ;;  %v531_v24 = vrot.slane %v529_v12, 5  ;;  %v2538_v12 = vld [vmem:[%s2355_s7 + $0x34] sm:$0xf] }
  0x2d   : > { %v541_v26 = vrot.slane %v539_v17, 4  ;;  %v577_v17 = vshll.u32 %v456_v11, 16 }
  0x2e   : > { %756 = vmatpush.bf16.msrb.mxu2 %v2092_v20  ;;  %829 = vmatpush.bf16.msrb.mxu3 %v2084_v21  ;;  %v679_v20 = vunpack.c.l.b16 %v500_v10  ;;  %v680_v21 = vunpack.c.l.b16 %v514_v13  ;;  %v571_v10 = vrot.slane %v569_v1, 5 }
  0x2f   : > { %401 = vmatpush.bf16.msrb.mxu1 %v2080_v30  ;;  %941 = vmatpush.bf16.msrb.mxu0 %v2096_v31  ;;  %v2070_v31 = vld [vmem:[%s2355_s7 + $0xc] sm:$0xff] }
  0x30   : > { %v695_v29 = vpack.c.b16 %v681_v22, %v680_v21  ;;  %v694_v30 = vpack.c.b16 %v679_v20, %v678_v18  ;;  %v583_v18 = vshll.u32 %v2538_v12, 16  ;;  %v587_v20 = vshrl.u32 %v2538_v12, 16 }
  0x32   : > { %757 = vmatpush.bf16.msrb.mxu2 %v2091_v32  ;;  %830 = vmatpush.bf16.msrb.mxu3 %v2083_v33  ;;  %v532_v32 = vor.u32 %v531_v24, %v528_v23  ;;  %v542_v33 = vor.u32 %v541_v26, %v537_v25  ;;  %v576_v23 = vrot.slane %v574_v15, 4  ;;  %v579_v24 = vrot.slane %v577_v17, 5 }
  0x33   : > { %402 = vmatpush.bf16.msrb.mxu1 %v2079_v45  ;;  %942 = vmatpush.bf16.msrb.mxu0 %v2095_v46  ;;  %v550_v45 = vshrl.u32 %v453_v35, 16  ;;  %v553_v46 = vshll.u32 %v453_v35, 16  ;;  %v589_v26 = vrot.slane %v587_v20, 4 }
  0x34   : > { %1799 = vmatmul.msk.bf16.gmra.mxu0 %vm281_vm0, %v2456_v50  ;;  %1801 = vmatmul.msk.bf16.gmra.mxu1 %vm281_vm0, %v2459_v51  ;;  %v533_v37 = vrot.slane %v532_v32, 4 }
  0x35   : > { %1803 = vmatmul.msk.bf16.gmra.mxu2 %vm281_vm0, %v2463_v55  ;;  %1805 = vmatmul.msk.bf16.gmra.mxu3 %vm281_vm0, %v2078_v56  ;;  %v552_v54 = vrot.slane %v550_v45, 4  ;;  %v555_v56 = vrot.slane %v553_v46, 5 }
  0x36   : > { %1306 = vmatpush.bf16.msra.mxu2 %v2106_v38  ;;  %1420 = vmatpush.bf16.msra.mxu3 %v2110_v39  ;;  %v543_v38 = vrot.slane %v542_v33, 4  ;;  %v547_v39 = vrot.slane %v545_v34, 5  ;;  %v538_v52 = vsel %vm2474_vm3, %v533_v37, %v537_v25  ;;  %v585_v25 = vrot.slane %v583_v18, 5  ;;  %v2104_v37 = vld [vmem:[%s3041_s1 + $0x48] sm:$0xff] }
  0x37   : > { %1067 = vmatpush.bf16.msra.mxu1 %v2102_v48  ;;  %1534 = vmatpush.bf16.msra.mxu0 %v2114_v49  ;;  %v559_v48 = vshll.u32 %v2502_v36, 16  ;;  %v563_v49 = vshrl.u32 %v2502_v36, 16  ;;  %v682_v59 = vunpack.c.l.b16 %v538_v52  ;;  %v556_v62 = vor.u32 %v555_v56, %v552_v54 }
  0x38   : > { %v548_v53 = vsel %vm2474_vm3, %v543_v38, %v547_v39  ;;  %v2100_v38 = vld [vmem:[%s3041_s1 + $0xe8] sm:$0xff]  ;;  %v459_v39 = vld [vmem:[%s2355_s7 + $0x3c] sm:$0xf] }
  0x39   : > { %v561_v57 = vrot.slane %v559_v48, 5  ;;  %v565_v58 = vrot.slane %v563_v49, 4  ;;  %v683_v60 = vunpack.c.l.b16 %v548_v53  ;;  %v557_v3 = vrot.slane %v556_v62, 4 }
  0x3a   : > { %1307 = vmatpush.bf16.msra.mxu2 %v2105_v41  ;;  %1421 = vmatpush.bf16.msra.mxu3 %v2109_v42  ;;  %v2571_v41 = vld [vmem:[%s2355_s7 + $0x40] sm:$0xf]  ;;  %v2112_v42 = vld [vmem:[%s3041_s1 + $0x108] sm:$0xff]  ;;  %v598_v45 = vshrl.u32 %v459_v39, 16  ;;  %v601_v46 = vshll.u32 %v459_v39, 16 }
  0x3b   : > { %1068 = vmatpush.bf16.msra.mxu1 %v2101_v43  ;;  %1535 = vmatpush.bf16.msra.mxu0 %v2113_v44  ;;  %v566_v0 = vor.u32 %v565_v58, %v561_v57  ;;  %v2528_v2 = vpack.c.b16 %v683_v60, %v682_v59  ;;  %v562_v13 = vsel %vm2474_vm3, %v557_v3, %v561_v57  ;;  %v607_v48 = vshll.u32 %v2571_v41, 16  ;;  %v2583_v59 = vld [vmem:[%s2355_s7 + $0x44] sm:$0x1]  ;;  %v462_v3 = vld [vmem:[%s2355_s7 + $0x48] sm:$0xf] }
  0x3c   : > { %v684_v21 = vunpack.c.l.b16 %v562_v13  ;;  %v611_v49 = vshrl.u32 %v2571_v41, 16  ;;  %v600_v54 = vrot.slane %v598_v45, 4  ;;  %v603_v56 = vrot.slane %v601_v46, 5  ;;  %v2622_v39 = vld [vmem:[%s2355_s7 + $0x58] sm:$0xf] }
  0x3d   : > { %v567_v5 = vrot.slane %v566_v0, 4  ;;  %v609_v57 = vrot.slane %v607_v48, 5  ;;  %v617_v1 = vshll.u32 %v2583_v59, 16  ;;  %v625_v15 = vshll.u32 %v462_v3, 16 }
  0x3e   : > { %1308 = vmatpush.bf16.msra.mxu2 %v2104_v37  ;;  %v613_v58 = vrot.slane %v611_v49, 4  ;;  %v604_v62 = vor.u32 %v603_v56, %v600_v54  ;;  %v655_v48 = vshll.u32 %v2622_v39, 16  ;;  %v659_v49 = vshrl.u32 %v2622_v39, 16 }
  0x3f   : > { %v572_v14 = vsel %vm2474_vm3, %v567_v5, %v571_v10  ;;  %1069 = vmatpush.bf16.msra.mxu1 %v2100_v38  ;;  %1536 = vmatpush.bf16.msra.mxu0 %v2112_v42  ;;  %v2594_v5 = vld [vmem:[%s2355_s7 + $0x4c] sm:$0xf]  ;;  %v619_v13 = vrot.slane %v617_v1, 5  ;;  %v465_v38 = vld [vmem:[%s2355_s7 + $0x54] sm:$0xf]  ;;  %v2103_v42 = vld [vmem:[%s3041_s1 + $0x40] sm:$0xff] }
  0x40   : > { %v685_v22 = vunpack.c.l.b16 %v572_v14  ;;  %v614_v0 = vor.u32 %v613_v58, %v609_v57  ;;  %v605_v10 = vrot.slane %v604_v62, 4  ;;  %v622_v14 = vshrl.u32 %v462_v3, 16  ;;  %v2643_v1 = vld [vmem:[%s2355_s7 + $0x5c] sm:$0x1] }
  0x41   : > { %v635_v17 = vshrl.u32 %v2594_v5, 16  ;;  %v646_v45 = vshrl.u32 %v465_v38, 16  ;;  %v649_v46 = vshll.u32 %v465_v38, 16  ;;  %v657_v62 = vrot.slane %v655_v48, 5  ;;  %v1130_v38 = vld [vmem:[%s2355_s7 + $0x18] sm:$0xe] }
  0x42   : > { %v615_v11 = vrot.slane %v614_v0, 4  ;;  %v610_v18 = vsel %vm2474_vm3, %v605_v10, %v609_v57  ;;  %1309 = vmatpush.bf16.msra.mxu2 %v2103_v42  ;;  %v661_v0 = vrot.slane %v659_v49, 4  ;;  %v2670_v42 = vld [vmem:[%s2355_s7 + $0x68] sm:$0x1] }
  0x43   : > { %v648_v57 = vrot.slane %v646_v45, 4  ;;  %v651_v58 = vrot.slane %v649_v46, 5 }
  0x44   : > { %1830 = vmatmul.msk.bf16.vlgmr.msrb.gmra.mxu1 %vm281_vm0, %v2069_v28  ;;  %1918 = vmatmul.msk.bf16.vlgmr.msrb.gmra.mxu0 %vm281_vm0, %v695_v29  ;;  %v2547_v28 = vld [vmem:[%s2355_s7 + $0x38] sm:$0x1]  ;;  %v620_v20 = vsel %vm2474_vm3, %v615_v11, %v619_v13  ;;  %v662_v11 = vor.u32 %v661_v0, %v657_v62  ;;  %v665_v13 = vshll.u32 %v2643_v1, 16 }
  0x45   : > { %1862 = vmatmul.msk.bf16.vlgmr.msrb.gmra.mxu2 %vm281_vm0, %v694_v30  ;;  %1886 = vmatmul.msk.bf16.vlgmr.msrb.gmra.mxu3 %vm281_vm0, %v2070_v31  ;;  %v580_v30 = vor.u32 %v579_v24, %v576_v23  ;;  %v593_v32 = vshll.u32 %v2547_v28, 16  ;;  %v637_v24 = vrot.slane %v635_v17, 4  ;;  %v652_v10 = vor.u32 %v651_v58, %v648_v57  ;;  %v468_v17 = vld [vmem:[%s2355_s7 + $0x60] sm:$0xf] }
  0x47   : > { %v581_v33 = vrot.slane %v580_v30, 4  ;;  %v595_v35 = vrot.slane %v593_v32, 5  ;;  %v2607_v30 = vld [vmem:[%s2355_s7 + $0x50] sm:$0x1] }
  0x49   : > { %v586_v43 = vsel %vm2474_vm3, %v581_v33, %v585_v25  ;;  %v641_v33 = vshll.u32 %v2607_v30, 16 }
  0x4a   : > { %v686_v52 = vunpack.c.l.b16 %v586_v43 }
  0x54   : > { %1831 = vmatmul.msk.bf16.gmra.mxu1 %vm281_vm0, %v2070_v31  ;;  %1919 = vmatmul.msk.bf16.gmra.mxu0 %vm281_vm0, %v2528_v2  ;;  %v590_v31 = vor.u32 %v589_v26, %v585_v25  ;;  %v688_v25 = vunpack.c.l.b16 %v610_v18  ;;  %v689_v26 = vunpack.c.l.b16 %v620_v20  ;;  %v2658_v18 = vld [vmem:[%s2355_s7 + $0x64] sm:$0xf]  ;;  %v1181_v20 = vrot.slane %v2480_v4, 5 }
  0x55   : > { %1863 = vmatmul.msk.bf16.gmra.mxu2 %vm281_vm0, %v695_v29  ;;  %1887 = vmatmul.msk.bf16.gmra.mxu3 %vm281_vm0, %v2364_v6  ;;  %v2549_v29 = vpack.c.b16 %v685_v22, %v684_v21  ;;  %v624_v21 = vrot.slane %v622_v14, 4  ;;  %v627_v22 = vrot.slane %v625_v15, 5  ;;  %v653_v14 = vrot.slane %v652_v10, 4 }
  0x56   : > { %v591_v34 = vrot.slane %v590_v31, 4  ;;  %v663_v15 = vrot.slane %v662_v11, 4 }
  0x57   : > { %v628_v31 = vor.u32 %v627_v22, %v624_v21  ;;  %v873_v22 = vshrl.u32 %v468_v17, 16 }
  0x58   : > { %v596_v44 = vsel %vm2474_vm3, %v591_v34, %v595_v35  ;;  %v2610_v34 = vpack.c.b16 %v689_v26, %v688_v25  ;;  %v886_v25 = vshrl.u32 %v2658_v18, 16  ;;  %v1183_v26 = vrot.slane %v1181_v20, 4 }
  0x59   : > { %v687_v53 = vunpack.c.l.b16 %v596_v44  ;;  %v629_v35 = vrot.slane %v628_v31, 4  ;;  %v1184_v31 = vrot.slane %v2493_v27, 5 }
  0x5b   : > { %v2585_v60 = vpack.c.b16 %v687_v53, %v686_v52  ;;  %v2099_v52 = vld [vmem:[%s3041_s1 + $0xe0] sm:$0xff]  ;;  %v1185_v27 = vsel %vm2672_vm6, %v1183_v26, %v1184_v31  ;;  %v1129_v31 = vld [vmem:[%s2355_s7 + $0xc] sm:$0xe] }
  0x5c   : > { %v2111_v53 = vld [vmem:[%s3041_s1 + $0x100] sm:$0xff]  ;;  %1070 = vmatpush.bf16.msra.mxu1 %v2099_v52  ;;  %v892_v52 = vshll.u32 %v2670_v42, 16 }
  0x5d   : > { %1537 = vmatpush.bf16.msra.mxu0 %v2111_v53  ;;  %v1128_v26 = vld [vmem:[%s2355_s7] sm:$0xe] }
  0x64   : > { %1832 = vmatmul.msk.bf16.gmra.mxu1 %vm281_vm0, %v2364_v6  ;;  %1920 = vmatmul.msk.bf16.gmra.mxu0 %vm281_vm0, %v2549_v29  ;;  %v2108_v6 = vld [vmem:[%s3041_s1 + $0xa8] sm:$0xff] }
  0x65   : > { %1864 = vmatmul.msk.bf16.gmra.mxu2 %vm281_vm0, %v2528_v2  ;;  %1888 = vmatmul.msk.bf16.gmra.mxu3 %vm281_vm0, %v2456_v50 }
  0x66   : > { %1422 = vmatpush.bf16.msra.mxu3 %v2108_v6  ;;  %v643_v6 = vrot.slane %v641_v33, 5 }
  0x74   : > { %1833 = vmatmul.msk.bf16.gmra.mxu1 %vm281_vm0, %v2456_v50  ;;  %1921 = vmatmul.msk.bf16.gmra.mxu0 %vm281_vm0, %v2585_v60  ;;  %v631_v50 = vshll.u32 %v2594_v5, 16 }
  0x75   : > { %1865 = vmatmul.msk.bf16.gmra.mxu2 %vm281_vm0, %v2549_v29  ;;  %1889 = vmatmul.msk.bf16.gmra.mxu3 %vm281_vm0, %v2367_v7 }
  0x76   : > { %v633_v23 = vrot.slane %v631_v50, 5  ;;  %v667_v50 = vrot.slane %v665_v13, 5 }
  0x78   : > { %v638_v32 = vor.u32 %v637_v24, %v633_v23  ;;  %v634_v43 = vsel %vm2474_vm3, %v629_v35, %v633_v23  ;;  %v668_v21 = vsel %vm2474_vm3, %v663_v15, %v667_v50  ;;  %v876_v23 = vshll.u32 %v468_v17, 16 }
  0x79   : > { %v690_v54 = vunpack.c.l.b16 %v634_v43  ;;  %v882_v24 = vshll.u32 %v2658_v18, 16  ;;  %v693_v33 = vunpack.c.l.b16 %v668_v21  ;;  %v875_v35 = vrot.slane %v873_v22, 4 }
  0x7a   : > { %v639_v37 = vrot.slane %v638_v32, 4  ;;  %v878_v4 = vrot.slane %v876_v23, 5  ;;  %v1960_v43 = vrot.slane %v1130_v38, 9 }
  0x7c   : > { %v644_v44 = vsel %vm2474_vm3, %v639_v37, %v643_v6  ;;  %v884_v37 = vrot.slane %v882_v24, 5  ;;  %v888_v6 = vrot.slane %v886_v25, 4  ;;  %v879_v48 = vor.u32 %v878_v4, %v875_v35 }
  0x7d   : > { %v691_v56 = vunpack.c.l.b16 %v644_v44  ;;  %v1182_v53 = vsel %vm2672_vm6, %v1960_v43, %v1181_v20  ;;  %v1167_v24 = vrot.slane %v2400_v16, 5  ;;  %v1174_v25 = vrot.slane %v2407_v19, 5 }
  0x7e   : > { %v889_v49 = vor.u32 %v888_v6, %v884_v37  ;;  %v880_v57 = vrot.slane %v879_v48, 4  ;;  %v1958_v16 = vrot.slane %v1128_v26, 9  ;;  %v1959_v35 = vrot.slane %v1129_v31, 9 }
  0x7f   : > { %v2645_v3 = vpack.c.b16 %v691_v56, %v690_v54  ;;  %v1235_v54 = vunpack.c.l.b16 %v1185_v27  ;;  %v1234_v56 = vunpack.c.l.b16 %v1182_v53  ;;  %v1169_v19 = vrot.slane %v1167_v24, 4 }
  0x80   : > { %v890_v58 = vrot.slane %v889_v49, 4  ;;  %v1176_v4 = vrot.slane %v1174_v25, 4  ;;  %v1191_v26 = vrot.slane %v2525_v61, 5 }
  0x81   : > { %v2693_v0 = vpack.c.b16 %v1235_v54, %v1234_v56 }
  0x84   : > { %1834 = vmatmul.msk.bf16.gmra.mxu1 %vm281_vm0, %v2367_v7  ;;  %1922 = vmatmul.msk.bf16.gmra.mxu0 %vm281_vm0, %v2610_v34  ;;  %v2107_v7 = vld [vmem:[%s3041_s1 + $0xa0] sm:$0xff] }
  0x85   : > { %1866 = vmatmul.msk.bf16.gmra.mxu2 %vm281_vm0, %v2585_v60  ;;  %1890 = vmatmul.msk.bf16.gmra.mxu3 %vm281_vm0, %v2459_v51 }
  0x86   : > { %1423 = vmatpush.bf16.msra.mxu3 %v2107_v7 }
  0x94   : > { %1835 = vmatmul.msk.bf16.gmra.mxu1 %vm281_vm0, %v2459_v51  ;;  %1923 = vmatmul.msk.bf16.gmra.mxu0 %vm281_vm0, %v2645_v3  ;;  %v658_v51 = vsel %vm2474_vm3, %v653_v14, %v657_v62  ;;  %v894_v62 = vrot.slane %v892_v52, 5  ;;  %v885_v14 = vsel %vm2474_vm3, %v880_v57, %v884_v37 }
  0x95   : > { %1867 = vmatmul.msk.bf16.gmra.mxu2 %vm281_vm0, %v2610_v34  ;;  %1891 = vmatmul.msk.bf16.gmra.mxu3 %vm281_vm0, %v2370_v8  ;;  %v692_v32 = vunpack.c.l.b16 %v658_v51  ;;  %v905_v50 = vunpack.c.l.b16 %v885_v14  ;;  %v1188_v14 = vrot.slane %v2502_v36, 5 }
  0x96   : > { %v895_v15 = vsel %vm2474_vm3, %v890_v58, %v894_v62 }
  0x97   : > { %v2676_v44 = vpack.c.b16 %v693_v33, %v692_v32  ;;  %v906_v17 = vunpack.c.l.b16 %v895_v15  ;;  %v1170_v32 = vrot.slane %v2438_v40, 5  ;;  %v1177_v33 = vrot.slane %v2447_v47, 5 }
  0x98   : > { %v1168_v40 = vsel %vm2672_vm6, %v1958_v16, %v1167_v24 }
  0x99   : > { %v2709_v21 = vpack.c.b16 %v906_v17, %v905_v50  ;;  %v1171_v47 = vsel %vm2672_vm6, %v1169_v19, %v1170_v32  ;;  %v1178_v43 = vsel %vm2672_vm6, %v1176_v4, %v1177_v33  ;;  %v1230_v27 = vunpack.c.l.b16 %v1168_v40  ;;  %v1131_v50 = vld [vmem:[%s2355_s7 + $0x24] sm:$0xe] }
  0x9a   : > { %v1231_v48 = vunpack.c.l.b16 %v1171_v47  ;;  %v1233_v52 = vunpack.c.l.b16 %v1178_v43  ;;  %v1961_v24 = vrot.slane %v1131_v50, 9 }
  0x9c   : > { %v1246_v58 = vpack.c.b16 %v1231_v48, %v1230_v27 }
  0xa1   : > { %v315_v45 = vpop.f32.mrf.mxu0  ;;  %v2680_v46 = vpop.f32.mrf.mxu1 }
  0xa4   : > { %1836 = vmatmul.msk.bf16.gmra.mxu1 %vm281_vm0, %v2370_v8  ;;  %1924 = vmatmul.msk.bf16.gmra.mxu0 %vm281_vm0, %v2676_v44 }
  0xa5   : > { %1868 = vmatmul.msk.bf16.gmra.mxu2 %vm281_vm0, %v2645_v3  ;;  %1892 = vmatmul.msk.bf16.gmra.mxu3 %vm281_vm0, %v2463_v55 }
  0xa8   : > { %v2695_v10 = vpop.f32.mrf.mxu2  ;;  %v2697_v11 = vpop.f32.mrf.mxu3 }
  0xa9   : > { %v317_v8 = vpop.f32.mrf.mxu0  ;;  %v2699_v13 = vpop.f32.mrf.mxu1 }
  0xb0   : > { %v2705_v20 = vpop.f32.mrf.mxu2  ;;  %v2707_v51 = vpop.f32.mrf.mxu3 }
  0xb1   : > { %v2711_v22 = vpop.f32.mrf.mxu0  ;;  %v2713_v23 = vpop.f32.mrf.mxu1 }
  0xb4   : > { %1837 = vmatmul.msk.bf16.gmra.mxu1 %vm281_vm0, %v2463_v55  ;;  %1925 = vmatmul.msk.bf16.gmra.mxu0 %vm281_vm0, %v2709_v21 }
  0xb5   : > { %1869 = vmatmul.msk.bf16.gmra.mxu2 %vm281_vm0, %v2676_v44  ;;  %1893 = vmatmul.msk.bf16.gmra.mxu3 %vm281_vm0, %v2373_v9  ;;  %v1175_v9 = vsel %vm2672_vm6, %v1959_v35, %v1174_v25  ;;  %v1190_v25 = vrot.slane %v1188_v14, 4 }
  0xb6   : > { %v1232_v49 = vunpack.c.l.b16 %v1175_v9 }
  0xb7   : > { %v1192_v16 = vsel %vm2672_vm6, %v1190_v25, %v1191_v26 }
  0xb8   : > { %v2729_v37 = vpop.f32.mrf.mxu2  ;;  %v2731_v55 = vpop.f32.mrf.mxu3  ;;  %v1247_v62 = vpack.c.b16 %v1233_v52, %v1232_v49  ;;  %v1237_v40 = vunpack.c.l.b16 %v1192_v16  ;;  %v1195_v49 = vrot.slane %v2538_v12, 5 }
  0xb9   : > { %v2733_v6 = vpop.f32.mrf.mxu0  ;;  %v2735_v38 = vpop.f32.mrf.mxu1 }
  0xba   : > { %v1197_v12 = vrot.slane %v1195_v49, 4 }
  0xc0   : > { %v2745_v53 = vpop.f32.mrf.mxu2  ;;  %v2747_v54 = vpop.f32.mrf.mxu3 }
  0xc1   : > { %v404_v56 = vpop.f32.mrf.mxu1  ;;  %v944_v57 = vpop.f32.mrf.mxu0 }
  0xc2   : > { %v405_v15 = vadd.f32 %v404_v56, %v315_v45  ;;  %v1132_v56 = vld [vmem:[%s2355_s7 + $0x30] sm:$0xe] }
  0xc4   : > { %v2751_v17 = vadd.f32 %v944_v57, %v405_v15  ;;  %1950 = vmatmul.msk.bf16.vlgmr.msra.gmra.mxu1 %vm281_vm0, %v2528_v2  ;;  %2056 = vmatmul.msk.bf16.vlgmr.msra.gmra.mxu0 %vm281_vm0, %v2693_v0  ;;  %v1189_v2 = vsel %vm2672_vm6, %v1961_v24, %v1188_v14 }
  0xc5   : > { %1990 = vmatmul.msk.bf16.vlgmr.msra.gmra.mxu2 %vm281_vm0, %v1246_v58  ;;  %2023 = vmatmul.msk.bf16.vlgmr.msra.gmra.mxu3 %vm281_vm0, %v1247_v62  ;;  %v1236_v4 = vunpack.c.l.b16 %v1189_v2  ;;  %v1962_v58 = vrot.slane %v1132_v56, 9 }
  0xc7   : > { %v2768_v9 = vpack.c.b16 %v1237_v40, %v1236_v4  ;;  %v1202_v4 = vrot.slane %v2571_v41, 5 }
  0xc8   : > { %v759_v31 = vpop.f32.mrf.mxu2  ;;  %v832_v36 = vpop.f32.mrf.mxu3 }
  0xc9   : > { %v2760_v45 = vadd.f32 %v832_v36, %v759_v31  ;;  %v406_v32 = vpop.f32.mrf.mxu1  ;;  %v946_v33 = vpop.f32.mrf.mxu0 }
  0xca   : > { %v407_v19 = vadd.f32 %v406_v32, %v317_v8  ;;  %v1198_v8 = vrot.slane %v2547_v28, 5 }
  0xcc   : > { %v2766_v35 = vadd.f32 %v946_v33, %v407_v19  ;;  %v1199_v28 = vsel %vm2672_vm6, %v1197_v12, %v1198_v8 }
  0xcd   : > { %v1239_v31 = vunpack.c.l.b16 %v1199_v28 }
  0xd0   : > { %v761_v47 = vpop.f32.mrf.mxu2  ;;  %v834_v61 = vpop.f32.mrf.mxu3 }
  0xd1   : > { %v2770_v43 = vadd.f32 %v834_v61, %v761_v47  ;;  %v409_v27 = vpop.f32.mrf.mxu1  ;;  %v949_v48 = vpop.f32.mrf.mxu0  ;;  %v1133_v47 = vld [vmem:[%s2355_s7 + $0x3c] sm:$0xe] }
  0xd2   : > { %v410_v52 = vadd.f32 %v409_v27, %v2711_v22  ;;  %v1963_v41 = vrot.slane %v1133_v47, 9  ;;  %v1204_v27 = vrot.slane %v1202_v4, 4 }
  0xd4   : > { %v2775_v57 = vadd.f32 %v949_v48, %v410_v52  ;;  %1951 = vmatmul.msk.bf16.gmra.mxu1 %vm281_vm0, %v2549_v29  ;;  %2057 = vmatmul.msk.bf16.gmra.mxu0 %vm281_vm0, %v2768_v9  ;;  %v1196_v29 = vsel %vm2672_vm6, %v1962_v58, %v1195_v49  ;;  %v1203_v56 = vsel %vm2672_vm6, %v1963_v41, %v1202_v4 }
  0xd5   : > { %1991 = vmatmul.msk.bf16.gmra.mxu2 %vm281_vm0, %v1247_v62  ;;  %2024 = vmatmul.msk.bf16.gmra.mxu3 %vm281_vm0, %v2693_v0  ;;  %v1238_v26 = vunpack.c.l.b16 %v1196_v29  ;;  %v1240_v58 = vunpack.c.l.b16 %v1203_v56 }
  0xd7   : > { %v2794_v33 = vpack.c.b16 %v1239_v31, %v1238_v26  ;;  %v1134_v31 = vld [vmem:[%s2355_s7 + $0x48] sm:$0xe] }
  0xd8   : > { %v764_v14 = vpop.f32.mrf.mxu2  ;;  %v837_v22 = vpop.f32.mrf.mxu3 }
  0xd9   : > { %v2785_v15 = vadd.f32 %v837_v22, %v764_v14  ;;  %v411_v50 = vpop.f32.mrf.mxu1  ;;  %v951_v24 = vpop.f32.mrf.mxu0 }
  0xda   : > { %v412_v62 = vadd.f32 %v411_v50, %v2733_v6  ;;  %v1205_v6 = vrot.slane %v2583_v59, 5 }
  0xdc   : > { %v2792_v25 = vadd.f32 %v951_v24, %v412_v62  ;;  %v1206_v59 = vsel %vm2672_vm6, %v1204_v27, %v1205_v6  ;;  %v1209_v62 = vrot.slane %v2594_v5, 5  ;;  %v1964_v5 = vrot.slane %v1134_v31, 9 }
  0xdd   : > { %v1241_v12 = vunpack.c.l.b16 %v1206_v59  ;;  %v1216_v59 = vrot.slane %v2622_v39, 5 }
  0xdf   : > { %v2821_v50 = vpack.c.b16 %v1241_v12, %v1240_v58  ;;  %v1135_v58 = vld [vmem:[%s2355_s7 + $0x54] sm:$0xe] }
  0xe0   : > { %v766_v36 = vpop.f32.mrf.mxu2  ;;  %v839_v32 = vpop.f32.mrf.mxu3  ;;  %v1965_v39 = vrot.slane %v1135_v58, 9 }
  0xe1   : > { %v2796_v2 = vadd.f32 %v839_v32, %v766_v36  ;;  %v414_v16 = vpop.f32.mrf.mxu1  ;;  %v954_v19 = vpop.f32.mrf.mxu0  ;;  %v1211_v32 = vrot.slane %v1209_v62, 4 }
  0xe2   : > { %v415_v40 = vadd.f32 %v414_v16, %v2680_v46 }
  0xe4   : > { %v2801_v61 = vadd.f32 %v954_v19, %v415_v40  ;;  %1952 = vmatmul.msk.bf16.gmra.mxu1 %vm281_vm0, %v2585_v60  ;;  %2058 = vmatmul.msk.bf16.gmra.mxu0 %vm281_vm0, %v2794_v33  ;;  %v1210_v40 = vsel %vm2672_vm6, %v1964_v5, %v1209_v62  ;;  %v1217_v62 = vsel %vm2672_vm6, %v1965_v39, %v1216_v59 }
  0xe5   : > { %1992 = vmatmul.msk.bf16.gmra.mxu2 %vm281_vm0, %v2693_v0  ;;  %2025 = vmatmul.msk.bf16.gmra.mxu3 %vm281_vm0, %v2768_v9  ;;  %v1242_v6 = vunpack.c.l.b16 %v1210_v40  ;;  %v1244_v31 = vunpack.c.l.b16 %v1217_v62  ;;  %v1136_v40 = vld [vmem:[%s2355_s7 + $0x60] sm:$0xe] }
  0xe8   : > { %v769_v46 = vpop.f32.mrf.mxu2  ;;  %v842_v48 = vpop.f32.mrf.mxu3 }
  0xe9   : > { %v2812_v49 = vadd.f32 %v842_v48, %v769_v46  ;;  %v416_v52 = vpop.f32.mrf.mxu1  ;;  %v956_v60 = vpop.f32.mrf.mxu0 }
  0xea   : > { %v417_v0 = vadd.f32 %v416_v52, %v2699_v13  ;;  %v1212_v13 = vrot.slane %v2607_v30, 5 }
  0xec   : > { %v2819_v8 = vadd.f32 %v956_v60, %v417_v0  ;;  %v1213_v30 = vsel %vm2672_vm6, %v1211_v32, %v1212_v13 }
  0xed   : > { %v1243_v41 = vunpack.c.l.b16 %v1213_v30  ;;  %v1372_v30 = vrot.slane %v2658_v18, 5 }
  0xef   : > { %v2848_v48 = vpack.c.b16 %v1243_v41, %v1242_v6  ;;  %v1998_v6 = vrot.slane %v1136_v40, 9  ;;  %v1375_v41 = vrot.slane %v2670_v42, 5  ;;  %v1374_v18 = vrot.slane %v1372_v30, 4 }
  0xf0   : > { %v771_v14 = vpop.f32.mrf.mxu2  ;;  %v844_v22 = vpop.f32.mrf.mxu3 }
  0xf1   : > { %v2823_v24 = vadd.f32 %v844_v22, %v771_v14  ;;  %v419_v29 = vpop.f32.mrf.mxu1  ;;  %v959_v28 = vpop.f32.mrf.mxu0  ;;  %v1218_v14 = vrot.slane %v1216_v59, 4 }
  0xf2   : > { %v420_v26 = vadd.f32 %v419_v29, %v2713_v23 }
  0xf4   : > { %v2828_v36 = vadd.f32 %v959_v28, %v420_v26  ;;  %1953 = vmatmul.msk.bf16.gmra.mxu1 %vm281_vm0, %v2610_v34  ;;  %2059 = vmatmul.msk.bf16.gmra.mxu0 %vm281_vm0, %v2821_v50 }
  0xf5   : > { %1993 = vmatmul.msk.bf16.gmra.mxu2 %vm281_vm0, %v2768_v9  ;;  %2026 = vmatmul.msk.bf16.gmra.mxu3 %vm281_vm0, %v2794_v33 }
  0xf8   : > { %v774_v23 = vpop.f32.mrf.mxu2  ;;  %v847_v16 = vpop.f32.mrf.mxu3 }
  0xf9   : > { %v2839_v19 = vadd.f32 %v847_v16, %v774_v23  ;;  %v421_v4 = vpop.f32.mrf.mxu1  ;;  %v961_v34 = vpop.f32.mrf.mxu0 }
  0xfa   : > { %v422_v9 = vadd.f32 %v421_v4, %v2735_v38  ;;  %v1219_v38 = vrot.slane %v2643_v1, 5 }
  0xfc   : > { %v2846_v47 = vadd.f32 %v961_v34, %v422_v9  ;;  %v1220_v1 = vsel %vm2672_vm6, %v1218_v14, %v1219_v38 }
  0xfd   : > { %v1245_v13 = vunpack.c.l.b16 %v1220_v1  ;;  %v473_v1 = vld [vmem:[%s2355_s7 + $0x74] sm:$0x1] }
  0xff   : > { %v2875_v23 = vpack.c.b16 %v1245_v13, %v1244_v31 }
 0x100   : > { %v776_v27 = vpop.f32.mrf.mxu2  ;;  %v849_v46 = vpop.f32.mrf.mxu3 }
 0x101   : > { %v2850_v52 = vadd.f32 %v849_v46, %v776_v27  ;;  %v424_v60 = vpop.f32.mrf.mxu1  ;;  %v964_v56 = vpop.f32.mrf.mxu0  ;;  %v471_v27 = vld [vmem:[%s2355_s7 + $0x6c] sm:$0xf] }
 0x102   : > { %v425_v0 = vadd.f32 %v424_v60, %v2695_v10  ;;  %v1004_v59 = vshll.u32 %v471_v27, 16 }
 0x104   : > { %v2855_v12 = vadd.f32 %v964_v56, %v425_v0  ;;  %1954 = vmatmul.msk.bf16.gmra.mxu1 %vm281_vm0, %v2645_v3  ;;  %2060 = vmatmul.msk.bf16.gmra.mxu0 %vm281_vm0, %v2848_v48  ;;  %v1001_v56 = vshrl.u32 %v471_v27, 16  ;;  %v1006_v62 = vrot.slane %v1004_v59, 5 }
 0x105   : > { %1994 = vmatmul.msk.bf16.gmra.mxu2 %vm281_vm0, %v2794_v33  ;;  %2027 = vmatmul.msk.bf16.gmra.mxu3 %vm281_vm0, %v2821_v50 }
 0x108   : > { %v779_v10 = vpop.f32.mrf.mxu2  ;;  %v852_v22 = vpop.f32.mrf.mxu3 }
 0x109   : > { %v2866_v29 = vadd.f32 %v852_v22, %v779_v10  ;;  %v426_v28 = vpop.f32.mrf.mxu1  ;;  %v966_v3 = vpop.f32.mrf.mxu0 }
 0x10a   : > { %v427_v33 = vadd.f32 %v426_v28, %v2705_v20 }
 0x10c   : > { %v2873_v26 = vadd.f32 %v966_v3, %v427_v33  ;;  %v1003_v3 = vrot.slane %v1001_v56, 4 }
 0x110   : > { %v781_v5 = vpop.f32.mrf.mxu2  ;;  %v854_v32 = vpop.f32.mrf.mxu3 }
 0x111   : > { %v2877_v16 = vadd.f32 %v854_v32, %v781_v5  ;;  %v429_v4 = vpop.f32.mrf.mxu1  ;;  %v969_v34 = vpop.f32.mrf.mxu0 }
 0x112   : > { %v430_v9 = vadd.f32 %v429_v4, %v2729_v37  ;;  %v472_v37 = vld [vmem:[%s2355_s7 + $0x70] sm:$0xf]  ;;  %v1007_v4 = vor.u32 %v1006_v62, %v1003_v3 }
 0x113   : > { %v1010_v38 = vshll.u32 %v472_v37, 16  ;;  %v1014_v39 = vshrl.u32 %v472_v37, 16 }
 0x114   : > { %v2882_v20 = vadd.f32 %v969_v34, %v430_v9  ;;  %1955 = vmatmul.msk.bf16.gmra.mxu1 %vm281_vm0, %v2676_v44  ;;  %2061 = vmatmul.msk.bf16.gmra.mxu0 %vm281_vm0, %v2875_v23  ;;  %v1373_v44 = vsel %vm2672_vm6, %v1998_v6, %v1372_v30  ;;  %v1020_v34 = vshll.u32 %v473_v1, 16  ;;  %v1486_v6 = vrot.slane %v472_v37, 5 }
 0x115   : > { %1995 = vmatmul.msk.bf16.gmra.mxu2 %vm281_vm0, %v2821_v50  ;;  %2028 = vmatmul.msk.bf16.gmra.mxu3 %vm281_vm0, %v2848_v48  ;;  %v1376_v50 = vsel %vm2672_vm6, %v1374_v18, %v1375_v41  ;;  %v1386_v10 = vunpack.c.l.b16 %v1373_v44  ;;  %v1012_v33 = vrot.slane %v1010_v38, 5  ;;  %v1016_v31 = vrot.slane %v1014_v39, 4  ;;  %v1137_v18 = vld [vmem:[%s2355_s7 + $0x6c] sm:$0xe]  ;;  %s158_s7 = sand.u32 1, %s2248_s10  }
 0x116   : > { %v1387_v28 = vunpack.c.l.b16 %v1376_v50  ;;  %v2031_v37 = vrot.slane %v1137_v18, 9  ;;  %v1488_v56 = vrot.slane %v1486_v6, 4  ;;  %s1732_s3 = sshll.u32 %s158_s7, 7  ;;  %s1628_s12 = scalar_lea.sflag [#allocation3], %s158_s7 }
 0x117   : > { %s2953_s4 = scalar_lea.vmem [#allocation2], %s1732_s3 }
 0x118   : > { %v784_v46 = vpop.f32.mrf.mxu2  ;;  %v857_v60 = vpop.f32.mrf.mxu3  ;;  %v1388_v32 = vpack.c.b16 %v1387_v28, %v1386_v10  ;;  %s1642_s16 = sshll.u32 %s2953_s4, 4  ;;  %s1643_s16 = int_to_ptr.vmem [resolvable:$true] %s1642_s16 }
 0x119   : > { %v2897_v0 = vadd.f32 %v857_v60, %v784_v46  ;;  %v431_v42 = vpop.f32.mrf.mxu1  ;;  %v971_v58 = vpop.f32.mrf.mxu0  ;;  %v1008_v46 = vrot.slane %v1007_v4, 4  ;;  %v1022_v60 = vrot.slane %v1020_v34, 5 }
 0x11a   : > { %v432_v14 = vadd.f32 %v431_v42, %v2745_v53  ;;  %v1017_v53 = vor.u32 %v1016_v31, %v1012_v33 }
 0x11c   : > { %v2902_v22 = vadd.f32 %v971_v58, %v432_v14  ;;  %v1018_v44 = vrot.slane %v1017_v53, 4  ;;  %v1013_v58 = vsel %vm2474_vm3, %v1008_v46, %v1012_v33 }
 0x11d   : > { %v1033_v28 = vunpack.c.l.b16 %v1013_v58 }
 0x11e   : > { %v1023_v39 = vsel %vm2474_vm3, %v1018_v44, %v1022_v60 }
 0x11f   : > { %v1034_v62 = vunpack.c.l.b16 %v1023_v39 }
 0x120   : > { %v786_v13 = vpop.f32.mrf.mxu2  ;;  %v859_v5 = vpop.f32.mrf.mxu3 }
 0x121   : > { %v2905_v40 = vadd.f32 %v859_v5, %v786_v13  ;;  %v434_v30 = vpop.f32.mrf.mxu1  ;;  %v974_v9 = vpop.f32.mrf.mxu0  ;;  %v1035_v5 = vpack.c.b16 %v1034_v62, %v1033_v28 }
 0x122   : > { %v435_v41 = vadd.f32 %v434_v30, %v2697_v11  ;;  %v1489_v11 = vrot.slane %v473_v1, 5 }
 0x124   : > { %v2909_v27 = vadd.f32 %v974_v9, %v435_v41  ;;  %1956 = vmatmul.msk.bf16.gmra.mxu1 %vm281_vm0, %v2709_v21  ;;  %2062 = vmatmul.msk.bf16.gmra.mxu0 %vm281_vm0, %v1388_v32  ;;  %v1490_v14 = vsel %vm2672_vm6, %v1488_v56, %v1489_v11 }
 0x125   : > { %1996 = vmatmul.msk.bf16.gmra.mxu2 %vm281_vm0, %v2848_v48  ;;  %2029 = vmatmul.msk.bf16.gmra.mxu3 %vm281_vm0, %v2875_v23  ;;  %v1487_v48 = vsel %vm2672_vm6, %v2031_v37, %v1486_v6  ;;  %v1501_v33 = vunpack.c.l.b16 %v1490_v14 }
 0x126   : > { %v1500_v1 = vunpack.c.l.b16 %v1487_v48 }
 0x128   : > { %v789_v59 = vpop.f32.mrf.mxu2  ;;  %v862_v42 = vpop.f32.mrf.mxu3  ;;  %v1502_v4 = vpack.c.b16 %v1501_v33, %v1500_v1 }
 0x129   : > { %v2920_v21 = vadd.f32 %v862_v42, %v789_v59  ;;  %v436_v50 = vpop.f32.mrf.mxu1  ;;  %v976_v38 = vpop.f32.mrf.mxu0 }
 0x12a   : > { %v437_v10 = vadd.f32 %v436_v50, %v2707_v51 }
 0x12c   : > { %v2929_v3 = vadd.f32 %v976_v38, %v437_v10 }
 0x130   : > { %v791_v31 = vpop.f32.mrf.mxu2  ;;  %v864_v13 = vpop.f32.mrf.mxu3 }
 0x131   : > { %v2931_v63 = vadd.f32 %v864_v13, %v791_v31  ;;  %v439_v34 = vpop.f32.mrf.mxu1  ;;  %v979_v30 = vpop.f32.mrf.mxu0 }
 0x132   : > { %v440_v9 = vadd.f32 %v439_v34, %v2731_v55 }
 0x134   : > { %v2934_v7 = vadd.f32 %v979_v30, %v440_v9  ;;  %1957 = vmatmul.msk.bf16.gmra.mxu1 %vm281_vm0, %v1035_v5  ;;  %2063 = vmatmul.msk.bf16.gmra.mxu0 %vm281_vm0, %v1502_v4 }
 0x135   : > { %1997 = vmatmul.msk.bf16.gmra.mxu2 %vm281_vm0, %v2875_v23  ;;  %2030 = vmatmul.msk.bf16.gmra.mxu3 %vm281_vm0, %v1388_v32 }
 0x138   : > { %v794_v51 = vpop.f32.mrf.mxu2  ;;  %v867_v53 = vpop.f32.mrf.mxu3 }
 0x139   : > { %v2941_v6 = vadd.f32 %v867_v53, %v794_v51  ;;  %v441_v41 = vpop.f32.mrf.mxu1  ;;  %v981_v18 = vpop.f32.mrf.mxu0 }
 0x13a   : > { %v442_v55 = vadd.f32 %v441_v41, %v2747_v54 }
 0x13c   : > { %v2944_v46 = vadd.f32 %v981_v18, %v442_v55 }
 0x140   : > { %v796_v60 = vpop.f32.mrf.mxu2  ;;  %v869_v44 = vpop.f32.mrf.mxu3 }
 0x141   : > { %v2946_v37 = vadd.f32 %v869_v44, %v796_v60  ;;  %v1072_v56 = vpop.f32.mrf.mxu1  ;;  %v1539_v11 = vpop.f32.mrf.mxu0 }
 0x142   : > { %v1112_v59 = vadd.f32 %v1072_v56, %v2760_v45 }
 0x148   : > { %v1311_v23 = vpop.f32.mrf.mxu2  ;;  %v1425_v32 = vpop.f32.mrf.mxu3 }
 0x149   : > { %v1351_v42 = vadd.f32 %v1311_v23, %v2751_v17  ;;  %v1074_v58 = vpop.f32.mrf.mxu1  ;;  %v1541_v50 = vpop.f32.mrf.mxu0  ;;  %v1465_v38 = vadd.f32 %v1425_v32, %v1112_v59 }
 0x14a   : > { %v1113_v10 = vadd.f32 %v1074_v58, %v2770_v43 }
 0x14b   : > { %v1579_v54 = vadd.f32 %v1539_v11, %v1351_v42 }
 0x14d   : > { %v1595_v39 = vadd.f32 %v1579_v54, %v1465_v38 }
 0x14f   : > { %1611 = vst [vmem:[%s2953_s4] sm:$0xff] %v1595_v39 }
 0x150   : > { %v1313_v48 = vpop.f32.mrf.mxu2  ;;  %v1427_v14 = vpop.f32.mrf.mxu3 }
 0x151   : > { %v1352_v45 = vadd.f32 %v1313_v48, %v2766_v35  ;;  %v1077_v17 = vpop.f32.mrf.mxu1  ;;  %v1544_v28 = vpop.f32.mrf.mxu0  ;;  %v1466_v1 = vadd.f32 %v1427_v14, %v1113_v10 }
 0x152   : > { %v1114_v5 = vadd.f32 %v1077_v17, %v2785_v15 }
 0x153   : > { %v1580_v62 = vadd.f32 %v1541_v50, %v1352_v45 }
 0x155   : > { %v1596_v33 = vadd.f32 %v1580_v62, %v1466_v1 }
 0x157   : > { %1612 = vst [vmem:[%s2953_s4 + $0x8] sm:$0xff] %v1596_v33 }
 0x158   : > { %v1316_v31 = vpop.f32.mrf.mxu2  ;;  %v1430_v13 = vpop.f32.mrf.mxu3 }
 0x159   : > { %v1353_v4 = vadd.f32 %v1316_v31, %v2775_v57  ;;  %v1079_v34 = vpop.f32.mrf.mxu1  ;;  %v1546_v30 = vpop.f32.mrf.mxu0  ;;  %v1467_v43 = vadd.f32 %v1430_v13, %v1114_v5 }
 0x15a   : > { %v1115_v41 = vadd.f32 %v1079_v34, %v2796_v2 }
 0x15b   : > { %v1581_v9 = vadd.f32 %v1544_v28, %v1353_v4 }
 0x15d   : > { %v1597_v51 = vadd.f32 %v1581_v9, %v1467_v43 }
 0x15f   : > { %1613 = vst [vmem:[%s2953_s4 + $0x10] sm:$0xff] %v1597_v51 }
 0x160   : > { %v1318_v35 = vpop.f32.mrf.mxu2  ;;  %v1432_v53 = vpop.f32.mrf.mxu3 }
 0x161   : > { %v1354_v18 = vadd.f32 %v1318_v35, %v2792_v25  ;;  %v1082_v55 = vpop.f32.mrf.mxu1  ;;  %v1549_v60 = vpop.f32.mrf.mxu0  ;;  %v1468_v15 = vadd.f32 %v1432_v53, %v1115_v41 }
 0x162   : > { %v1116_v23 = vadd.f32 %v1082_v55, %v2812_v49 }
 0x163   : > { %v1582_v44 = vadd.f32 %v1546_v30, %v1354_v18 }
 0x165   : > { %v1598_v56 = vadd.f32 %v1582_v44, %v1468_v15 }
 0x167   : > { %1614 = vst [vmem:[%s2953_s4 + $0x18] sm:$0xff] %v1598_v56 }
 0x168   : > { %v1321_v57 = vpop.f32.mrf.mxu2  ;;  %v1435_v11 = vpop.f32.mrf.mxu3 }
 0x169   : > { %v1355_v32 = vadd.f32 %v1321_v57, %v2801_v61  ;;  %v1084_v59 = vpop.f32.mrf.mxu1  ;;  %v1551_v42 = vpop.f32.mrf.mxu0  ;;  %v1469_v2 = vadd.f32 %v1435_v11, %v1116_v23 }
 0x16a   : > { %v1117_v38 = vadd.f32 %v1084_v59, %v2823_v24 }
 0x16b   : > { %v1583_v58 = vadd.f32 %v1549_v60, %v1355_v32 }
 0x16d   : > { %v1599_v50 = vadd.f32 %v1583_v58, %v1469_v2 }
 0x16f   : > { %1615 = vst [vmem:[%s2953_s4 + $0x20] sm:$0xff] %v1599_v50 }
 0x170   : > { %v1323_v25 = vpop.f32.mrf.mxu2  ;;  %v1437_v54 = vpop.f32.mrf.mxu3 }
 0x171   : > { %v1356_v39 = vadd.f32 %v1323_v25, %v2819_v8  ;;  %v1087_v48 = vpop.f32.mrf.mxu1  ;;  %v1554_v14 = vpop.f32.mrf.mxu0  ;;  %v1470_v49 = vadd.f32 %v1437_v54, %v1117_v38 }
 0x172   : > { %v1118_v28 = vadd.f32 %v1087_v48, %v2839_v19 }
 0x173   : > { %v1584_v10 = vadd.f32 %v1551_v42, %v1356_v39 }
 0x175   : > { %v1600_v45 = vadd.f32 %v1584_v10, %v1470_v49 }
 0x177   : > { %1616 = vst [vmem:[%s2953_s4 + $0x28] sm:$0xff] %v1600_v45 }
 0x178   : > { %v1326_v61 = vpop.f32.mrf.mxu2  ;;  %v1440_v17 = vpop.f32.mrf.mxu3 }
 0x179   : > { %v1357_v62 = vadd.f32 %v1326_v61, %v2828_v36  ;;  %v1089_v1 = vpop.f32.mrf.mxu1  ;;  %v1556_v33 = vpop.f32.mrf.mxu0  ;;  %v1471_v24 = vadd.f32 %v1440_v17, %v1118_v28 }
 0x17a   : > { %v1119_v4 = vadd.f32 %v1089_v1, %v2850_v52 }
 0x17b   : > { %v1585_v31 = vadd.f32 %v1554_v14, %v1357_v62 }
 0x17d   : > { %v1601_v13 = vadd.f32 %v1585_v31, %v1471_v24 }
 0x17f   : > { %1617 = vst [vmem:[%s2953_s4 + $0x30] sm:$0xff] %v1601_v13 }
 0x180   : > { %v1328_v8 = vpop.f32.mrf.mxu2  ;;  %v1442_v5 = vpop.f32.mrf.mxu3 }
 0x181   : > { %v1358_v34 = vadd.f32 %v1328_v8, %v2846_v47  ;;  %v1092_v30 = vpop.f32.mrf.mxu1  ;;  %v1559_v9 = vpop.f32.mrf.mxu0  ;;  %v1472_v19 = vadd.f32 %v1442_v5, %v1119_v4 }
 0x182   : > { %v1120_v53 = vadd.f32 %v1092_v30, %v2866_v29 }
 0x183   : > { %v1586_v43 = vadd.f32 %v1556_v33, %v1358_v34 }
 0x185   : > { %v1602_v51 = vadd.f32 %v1586_v43, %v1472_v19 }
 0x187   : > { %1618 = vst [vmem:[%s2953_s4 + $0x38] sm:$0xff] %v1602_v51 }
 0x188   : > { %v1331_v36 = vpop.f32.mrf.mxu2  ;;  %v1445_v35 = vpop.f32.mrf.mxu3 }
 0x189   : > { %v1359_v41 = vadd.f32 %v1331_v36, %v2855_v12  ;;  %v1094_v18 = vpop.f32.mrf.mxu1  ;;  %v1561_v55 = vpop.f32.mrf.mxu0  ;;  %v1473_v52 = vadd.f32 %v1445_v35, %v1120_v53 }
 0x18a   : > { %v1121_v56 = vadd.f32 %v1094_v18, %v2877_v16 }
 0x18b   : > { %v1587_v60 = vadd.f32 %v1559_v9, %v1359_v41 }
 0x18d   : > { %v1603_v44 = vadd.f32 %v1587_v60, %v1473_v52 }
 0x18f   : > { %1619 = vst [vmem:[%s2953_s4 + $0x40] sm:$0xff] %v1603_v44 }
 0x190   : > { %v1333_v47 = vpop.f32.mrf.mxu2  ;;  %v1447_v15 = vpop.f32.mrf.mxu3 }
 0x191   : > { %v1360_v57 = vadd.f32 %v1333_v47, %v2873_v26  ;;  %v1097_v11 = vpop.f32.mrf.mxu1  ;;  %v1564_v23 = vpop.f32.mrf.mxu0  ;;  %v1474_v29 = vadd.f32 %v1447_v15, %v1121_v56 }
 0x192   : > { %v1122_v58 = vadd.f32 %v1097_v11, %v2897_v0 }
 0x193   : > { %v1588_v32 = vadd.f32 %v1561_v55, %v1360_v57 }
 0x195   : > { %v1604_v59 = vadd.f32 %v1588_v32, %v1474_v29 }
 0x197   : > { %1620 = vst [vmem:[%s2953_s4 + $0x48] sm:$0xff] %v1604_v59 }
 0x198   : > { %v1336_v12 = vpop.f32.mrf.mxu2  ;;  %v1450_v42 = vpop.f32.mrf.mxu3 }
 0x199   : > { %v1361_v2 = vadd.f32 %v1336_v12, %v2882_v20  ;;  %v1099_v50 = vpop.f32.mrf.mxu1  ;;  %v1566_v25 = vpop.f32.mrf.mxu0  ;;  %v1475_v16 = vadd.f32 %v1450_v42, %v1122_v58 }
 0x19a   : > { %v1123_v48 = vadd.f32 %v1099_v50, %v2905_v40 }
 0x19b   : > { %v1589_v54 = vadd.f32 %v1564_v23, %v1361_v2 }
 0x19d   : > { %v1605_v38 = vadd.f32 %v1589_v54, %v1475_v16 }
 0x19f   : > { %1621 = vst [vmem:[%s2953_s4 + $0x50] sm:$0xff] %v1605_v38 }
 0x1a0   : > { %v1338_v26 = vpop.f32.mrf.mxu2  ;;  %v1452_v39 = vpop.f32.mrf.mxu3 }
 0x1a1   : > { %v1362_v14 = vadd.f32 %v1338_v26, %v2902_v22  ;;  %v1102_v10 = vpop.f32.mrf.mxu1  ;;  %v1476_v45 = vadd.f32 %v1452_v39, %v1123_v48  ;;  %v1569_v0 = vpop.f32.mrf.mxu0 }
 0x1a2   : > { %v1124_v28 = vadd.f32 %v1102_v10, %v2920_v21 }
 0x1a3   : > { %v1590_v49 = vadd.f32 %v1566_v25, %v1362_v14 }
 0x1a5   : > { %v1606_v61 = vadd.f32 %v1590_v49, %v1476_v45 }
 0x1a7   : > { %1622 = vst [vmem:[%s2953_s4 + $0x58] sm:$0xff] %v1606_v61 }
 0x1a8   : > { %v1341_v20 = vpop.f32.mrf.mxu2  ;;  %v1455_v17 = vpop.f32.mrf.mxu3 }
 0x1a9   : > { %v1363_v62 = vadd.f32 %v1341_v20, %v2909_v27  ;;  %v1104_v1 = vpop.f32.mrf.mxu1  ;;  %v1477_v31 = vadd.f32 %v1455_v17, %v1124_v28  ;;  %v1571_v24 = vpop.f32.mrf.mxu0 }
 0x1aa   : > { %v1125_v8 = vadd.f32 %v1104_v1, %v2931_v63 }
 0x1ab   : > { %v1591_v33 = vadd.f32 %v1569_v0, %v1363_v62 }
 0x1ad   : > { %v1607_v40 = vadd.f32 %v1591_v33, %v1477_v31 }
 0x1af   : > { %1623 = vst [vmem:[%s2953_s4 + $0x60] sm:$0xff] %v1607_v40 }
 0x1b0   : > { %v1343_v22 = vpop.f32.mrf.mxu2  ;;  %v1457_v13 = vpop.f32.mrf.mxu3 }
 0x1b1   : > { %v1364_v5 = vadd.f32 %v1343_v22, %v2929_v3  ;;  %v1478_v34 = vadd.f32 %v1457_v13, %v1125_v8  ;;  %v1107_v21 = vpop.f32.mrf.mxu1  ;;  %v1574_v27 = vpop.f32.mrf.mxu0 }
 0x1b2   : > { %v1126_v19 = vadd.f32 %v1107_v21, %v2941_v6 }
 0x1b3   : > { %v1592_v4 = vadd.f32 %v1571_v24, %v1364_v5 }
 0x1b5   : > { %v1608_v30 = vadd.f32 %v1592_v4, %v1478_v34 }
 0x1b7   : > { %1624 = vst [vmem:[%s2953_s4 + $0x68] sm:$0xff] %v1608_v30 }
 0x1b8   : > { %v1346_v9 = vpop.f32.mrf.mxu2  ;;  %v1460_v43 = vpop.f32.mrf.mxu3 }
 0x1b9   : > { %v1365_v51 = vadd.f32 %v1346_v9, %v2934_v7  ;;  %v1479_v35 = vadd.f32 %v1460_v43, %v1126_v19  ;;  %v1109_v3 = vpop.f32.mrf.mxu1  ;;  %v1576_v7 = vpop.f32.mrf.mxu0 }
 0x1ba   : > { %v1127_v18 = vadd.f32 %v1109_v3, %v2946_v37 }
 0x1bb   : > { %v1593_v36 = vadd.f32 %v1574_v27, %v1365_v51 }
 0x1bd   : > { %v1609_v63 = vadd.f32 %v1593_v36, %v1479_v35 }
 0x1bf   : > { %1625 = vst [vmem:[%s2953_s4 + $0x70] sm:$0xff] %v1609_v63 }
 0x1c0   : > { %v1348_v53 = vpop.f32.mrf.mxu2  ;;  %v1462_v41 = vpop.f32.mrf.mxu3 }
 0x1c1   : > { %v1366_v6 = vadd.f32 %v1348_v53, %v2944_v46  ;;  %v1480_v60 = vadd.f32 %v1462_v41, %v1127_v18 }
 0x1c3   : > { %v1594_v55 = vadd.f32 %v1576_v7, %v1366_v6 }
 0x1c5   : > { %v1610_v52 = vadd.f32 %v1594_v55, %v1480_v60 }
 0x1c7   : > { %1626 = vst [vmem:[%s2953_s4 + $0x78] sm:$0xff] %v1610_v52 }
 0x1c8   : > { %2213 = shalt.err (!%p2210_p5)
}
 0x1c9   : > { %s2266_s29 = smov 128   ;;  %s2267_s30 = smov 8  }
 0x1ca   : > { %2129 = dma.vmem_to_hbm [thread:$0]  (%p2323_p4), %s1643_s16, 2048, %s1645_s18, %s1628_s12, %s2266_s29, %s2266_s29, %s2267_s30  }
 0x1cb PF: > { %p2135_p6 = scmp.ge.s32.totalorder %s2264_s14, 2  ;;  %s1659_s7 = sand.u32 1, %s2244_s9  }
 0x1cc   : > { %s1660_s3 = scalar_lea.sflag [#allocation3], %s1659_s7 }
 0x1cd   : > { %p2132_p7 = pnand %p2135_p6, %p2330_p8 }
 0x1cf   : > { %p2133_p9 = pneg %p2132_p7 }
 0x1d1   : > { %2239 = dma.done.wait (%p2133_p9), %s1660_s3, 2048  }
 0x1d2   : > { %2241 = vsyncadd (%p2133_p9), %s1660_s3, 4294965248  ;;  %s15_s14 = sadd.s32 1, %s2264_s14   ;;  %s3049_s9 = smov %s2248_s10 }
 0x1d3   : > { %p12_p10 = scmp.ge.s32.totalorder %s15_s14, 4   ;;  %s3050_s10 = smov %s2252_s11 }
 0x1d4   : > { %s3051_s11 = smov %s2336_s22  ;;  %s3052_s12 = smov %s2260_s13 }
 0x1d5   : > { %s3053_s13 = smov %s3055_s17  ;;  %14 = sbr.rel (!%p12_p10) target bundleno = 4 (0x4), region = 71 }
 0x1da   :  { %1666 = vsyncpa [#allocation3], 1 }
 0x1db   :  { %1668 = vsyncpa [#allocation3 + $0x1], 1 }

</bundles_post_ra>
